<compile_context>
chip_gen: v5e
topology: v5e:2x2
jax: 0.10.0
libtpu: 0.0.40
codegen_flags: <defaults>
</compile_context>

<pallas_src>
import jax
import jax.numpy as jnp
from jax import lax
from jax.experimental import pallas as pl
from jax.experimental.pallas import tpu as pltpu

# ----- "conf" (small synthetic sizes consistent with the module) -----
ABAE_VOCAB_SZ = 64
ABAE_WORD_DIM = 32   # conf.abae_word_dim (D)
ASP_DIM       = 8    # conf.asp_dim       (A)
SEQ_LEN       = 16   # conf.seq_len       (L)
NUM_NEG_SENT  = 2    # conf.num_neg_sent  (NN)
BATCH         = 8    # B

OUT_LANES = 128              # single packed lane-dense output (B, 128)
J_LANE = ASP_DIM             # lane carrying the margin-ranking (J) loss
U_LANE = ASP_DIM + 1         # lane carrying the orthogonality (U) loss


def _l2norm(x, axis):
    # F.normalize(x, p=2, dim=axis): x / max(||x||_2, eps), eps = 1e-12
    n = jnp.sqrt(jnp.sum(x * x, axis=axis, keepdims=True))
    return x / jnp.maximum(n, 1e-12)


def _group_matrix(shape, group_axis, item_axis, items_per_group, dtype=jnp.bfloat16):
    """0/1 matrix: entry is 1 iff item index falls in the group's contiguous block.

    Built from iota + integer mul + compares (no integer division) so it lowers
    cleanly on the VPU; used to turn segment sums / repeats into MXU matmuls.
    0/1 is exact in bf16, so these are lossless MXU operands.
    """
    g = lax.broadcasted_iota(jnp.int32, shape, group_axis)
    r = lax.broadcasted_iota(jnp.int32, shape, item_axis)
    lo = g * items_per_group
    return ((r >= lo) & (r < lo + items_per_group)).astype(dtype)


def encoder2_kernel(ids_ref, emb_ref, m_ref, wwt_ref, wb_ref, twt_ref, out_ref):
    f32 = jnp.float32
    bf16 = jnp.bfloat16

    ids = ids_ref[...]            # (N, 1) int32: B*L pos token ids then B*NN*L neg ids
    emb = emb_ref[...]            # (V, D)  f32
    M   = m_ref[...]              # (D, D)  transform_M.weight (torch layout)
    WwT = wwt_ref[...]            # (D, A)  transform_W.weight, pre-transposed
    Wb  = wb_ref[...]             # (1, A)  transform_W.bias
    TwT = twt_ref[...]            # (A, D)  transform_T.weight, pre-transposed

    V, D = emb.shape
    A = TwT.shape[0]
    L, NN = SEQ_LEN, NUM_NEG_SENT
    B = out_ref.shape[0]
    BN = B * NN
    BL = B * L
    N = ids.shape[0]              # == BL + BN * L

    # ---- fused embedding gather: ONE one-hot @ table matmul for pos AND neg ----
    # (gathered rows are exactly bf16(emb); one-hots are exact in bf16)
    oh = (ids == lax.broadcasted_iota(jnp.int32, (N, V), 1)).astype(bf16)   # (N, V)
    e_all = jnp.dot(oh, emb.astype(bf16), preferred_element_type=f32)       # (N, D)
    mask_all = (ids > 0).astype(f32)                                        # (N, 1)

    # ---- context vectors: one block-diagonal segment-sum matmul fused with counts
    S_all = _group_matrix((B + BN, N), 0, 1, L)                             # (B+BN, N)
    sums = jnp.dot(S_all,
                   jnp.concatenate([e_all, mask_all], axis=1).astype(bf16),
                   preferred_element_type=f32)                              # (B+BN, D+1)
    ctx = sums[:, :D] / (sums[:, D:D + 1] + 1e-6)
    y_s = ctx[:B]                                                           # (B, D)
    z_n = ctx[B:]                                                           # (BN, D)

    # ---- attention: dx[b,l] = e_pos[b,l] . (y_s[b] @ M)  (lane-dense token repeat)
    e_pos = e_all[:BL]                                                      # (BL, D)
    pos_mask = mask_all[:BL]                                                # (BL, 1)
    yM = jnp.dot(y_s.astype(bf16), M.astype(bf16),
                 preferred_element_type=f32)                                # (B, D)
    Rpos = _group_matrix((BL, B), 1, 0, L)                                  # (BL, B)
    yM_tok = jnp.dot(Rpos, yM.astype(bf16), preferred_element_type=f32)     # (BL, D)
    dx = jnp.sum(e_pos * yM_tok, axis=1, keepdims=True)                     # (BL, 1)
    dx = jnp.where(dx < 80.0, dx, 0.0)                                      # dx_mask*dx
    ax = jnp.exp(dx) * pos_mask                                             # (BL, 1)

    Spos = _group_matrix((B, BL), 0, 1, L)                                  # (B, BL)
    att = jnp.dot(Spos,
                  jnp.concatenate([e_pos * ax, ax], axis=1).astype(bf16),
                  preferred_element_type=f32)                               # (B, D+1)
    z_s = att[:, :D] / (att[:, D:D + 1] + 1e-6)                             # (B, D)

    # ---- aspect distribution p_t = softmax(z_s @ Ww.T + b) ----
    logits = jnp.dot(z_s.astype(bf16), WwT.astype(bf16),
                     preferred_element_type=f32) + Wb                       # (B, A)
    logits = logits - jnp.max(logits, axis=1, keepdims=True)
    expl = jnp.exp(logits)
    p_t = expl / jnp.sum(expl, axis=1, keepdims=True)                       # (B, A) f32

    # ---- reconstruction + margin-ranking (J) loss ----
    r_s = jnp.dot(p_t.astype(bf16), TwT.astype(bf16),
                  preferred_element_type=f32)                               # (B, D)
    r_n  = _l2norm(r_s, 1)                                                  # (B, D)
    z_sn = _l2norm(z_s, 1)                                                  # (B, D)
    z_nn = _l2norm(z_n, 1)                                                  # (BN, D)
    c1 = jnp.sum(r_n * z_sn, axis=1, keepdims=True)                         # (B, 1)
    Rneg = _group_matrix((BN, B), 1, 0, NN)                                 # (BN, B)
    rep = jnp.dot(Rneg,
                  jnp.concatenate([r_n, c1], axis=1).astype(bf16),
                  preferred_element_type=f32)                               # (BN, D+1)
    # rowsum([z_nn | -1] * [r_n_rep | c1_rep]) = c2 - c1_rep
    z_ext = jnp.concatenate([z_nn, jnp.full((BN, 1), -1.0, f32)], axis=1)   # (BN, D+1)
    hinge = jnp.maximum(0.0, 1.0 + jnp.sum(z_ext * rep, axis=1, keepdims=True))
    j11 = jnp.sum(hinge, axis=0, keepdims=True) * (1.0 / BN)                # (1, 1)

    # ---- orthogonality (U) loss: ||Tn.T @ Tn - I||_F^2, Tn column-normalized ----
    TnT = _l2norm(TwT, 1)                                                   # (A, D) f32
    G = lax.dot_general(TnT, TnT, (((1,), (1,)), ((), ())),
                        preferred_element_type=f32)                         # (A, A)
    eye = (lax.broadcasted_iota(jnp.int32, (A, A), 0) ==
           lax.broadcasted_iota(jnp.int32, (A, A), 1)).astype(f32)
    diff = G - eye
    u11 = jnp.sum(jnp.sum(diff * diff, axis=1, keepdims=True),
                  axis=0, keepdims=True)                                    # (1, 1)

    # ---- single lane-dense (B, 128) full-tile store: [p_t | J | U | zeros] ----
    out_ref[...] = jnp.concatenate(
        [p_t,
         j11 * jnp.ones((B, 1), f32),
         u11 * jnp.ones((B, 1), f32),
         jnp.zeros((B, OUT_LANES - A - 2), f32)], axis=1)


@jax.jit
def encoder2_forward(pos_rev, neg_rev, params):
    """pos_rev: (B, L) int32, neg_rev: (B*NN, L) int32 (row order b*NN + n)."""
    B, L = pos_rev.shape
    # pack pos and neg token ids into one token-row array -> one fused gather matmul
    ids = jnp.concatenate([pos_rev.reshape(-1), neg_rev.reshape(-1)], axis=0)
    ids = ids.astype(jnp.int32).reshape(-1, 1)

    vmem = pl.BlockSpec(memory_space=pltpu.MemorySpace.VMEM)
    # ~1.2M MACs across 9 small matmuls, ~200 transcendentals, ~20 KiB IO
    cost = pl.CostEstimate(flops=2_400_000, transcendentals=256, bytes_accessed=20_480)

    out = pl.pallas_call(
        encoder2_kernel,
        out_shape=jax.ShapeDtypeStruct((B, OUT_LANES), jnp.float32),
        in_specs=[vmem] * 6,
        out_specs=vmem,
        cost_estimate=cost,
    )(ids, params["emb"], params["M"], params["WwT"], params["Wb"], params["TwT"])

    p_t = out[:, :ASP_DIM]
    j_loss = out[0, J_LANE]
    u_loss = out[0, U_LANE]
    return p_t, j_loss, u_loss


def init_params(key):
    kE, kM, kW, kT = jax.random.split(key, 4)

    def xavier(k, shape):  # torch xavier_uniform_ on a (fan_out, fan_in) weight
        fan_out, fan_in = shape
        bound = jnp.sqrt(6.0 / (fan_in + fan_out))
        return jax.random.uniform(k, shape, jnp.float32, -bound, bound)

    Ww = xavier(kW, (ASP_DIM, ABAE_WORD_DIM))        # transform_W.weight (A, D)
    Tw = xavier(kT, (ABAE_WORD_DIM, ASP_DIM))        # transform_T.weight (D, A)
    return {
        "emb": jax.random.normal(kE, (ABAE_VOCAB_SZ, ABAE_WORD_DIM), jnp.float32) * 0.1,
        "M":   xavier(kM, (ABAE_WORD_DIM, ABAE_WORD_DIM)),   # transform_M.weight
        # weights stored pre-transposed so the kernel never does an in-kernel .T:
        "WwT": Ww.T,                                  # (D, A)
        "Wb":  jnp.zeros((1, ASP_DIM), jnp.float32),  # transform_W.bias (zeros)
        "TwT": Tw.T,                                  # (A, D)
    }


def encoder2_reference(pos_rev, neg_rev, params):
    """Pure-JAX mirror of the PyTorch forward (for parity checking)."""
    emb = params["emb"]
    M = params["M"]
    Ww = params["WwT"].T
    Wb = params["Wb"][0]
    Tw = params["TwT"].T
    pos_emb = emb[pos_rev]                     # (B, L, D)
    neg_emb = emb[neg_rev]                     # (BN, L, D)
    B, L, D = pos_emb.shape
    A = Ww.shape[0]
    NN = NUM_NEG_SENT

    pos_mask = (pos_rev > 0).astype(jnp.float32)
    neg_mask = (neg_rev > 0).astype(jnp.float32)
    y_s = jnp.sum(pos_emb, axis=1) / (jnp.sum(pos_mask, axis=1, keepdims=True) + 1e-6)
    z_n = jnp.sum(neg_emb, axis=1) / (jnp.sum(neg_mask, axis=1, keepdims=True) + 1e-6)

    dx = jnp.einsum('bld,bd->bl', pos_emb @ M.T, y_s)
    dx = jnp.where(dx < 80.0, dx, 0.0)
    ax = jnp.exp(dx) * pos_mask
    ax = ax / (jnp.sum(ax, axis=1, keepdims=True) + 1e-6)
    z_s = jnp.einsum('bl,bld->bd', ax, pos_emb)

    p_t = jax.nn.softmax(z_s @ Ww.T + Wb, axis=1)
    r_s = p_t @ Tw.T

    c1 = jnp.sum(_l2norm(r_s, 1) * _l2norm(z_s, 1), axis=1, keepdims=True)
    c1 = jnp.repeat(c1, NN, axis=1).reshape(-1)
    z_n3 = z_n.reshape(B, NN, D)
    c2 = jnp.sum(_l2norm(z_n3, 2) * _l2norm(r_s, 1)[:, None, :], axis=2).reshape(-1)
    j_loss = jnp.mean(jnp.maximum(0.0, 1.0 - c1 + c2))

    Tn = Tw / jnp.maximum(jnp.sqrt(jnp.sum(Tw * Tw, axis=0, keepdims=True)), 1e-12)
    u_loss = jnp.sum((Tn.T @ Tn - jnp.eye(A)) ** 2)
    return p_t, j_loss, u_loss


if __name__ == "__main__":
    key = jax.random.PRNGKey(0)
    kp, kn, kparams = jax.random.split(key, 3)

    # token ids; 0 acts as padding (masked in the attention), so allow zeros
    pos_rev = jax.random.randint(kp, (BATCH, SEQ_LEN), 0, ABAE_VOCAB_SZ, jnp.int32)
    neg_rev = jax.random.randint(kn, (BATCH * NUM_NEG_SENT, SEQ_LEN), 0,
                                 ABAE_VOCAB_SZ, jnp.int32)
    params = init_params(kparams)

    p_t, j_loss, u_loss = jax.block_until_ready(
        encoder2_forward(pos_rev, neg_rev, params))

    # parity against a full-f32-precision pure-JAX mirror of the torch forward
    with jax.default_matmul_precision("float32"):
        p_ref, j_ref, u_ref = encoder2_reference(pos_rev, neg_rev, params)

    assert p_t.shape == (BATCH, ASP_DIM)
    assert bool(jnp.all(jnp.isfinite(p_t)))
    assert bool(jnp.isfinite(j_loss)) and bool(jnp.isfinite(u_loss))
    assert jnp.allclose(jnp.sum(p_t, axis=1), jnp.ones((BATCH,)), atol=1e-3)
    # tolerances cover bf16 MXU operands (recommended; MXU-native on all generations)
    assert jnp.allclose(p_t, p_ref, atol=1e-2, rtol=1e-2)
    assert jnp.allclose(j_loss, j_ref, atol=2e-2, rtol=2e-2)
    assert jnp.allclose(u_loss, u_ref, atol=3e-2, rtol=3e-2)
    print("KERNEL_OK")
</pallas_src>

<mosaic_0001>
module attributes {stable_mosaic.version = 11 : i64} {
  func.func @encoder2_kernel(%arg0: memref<384x1xi32, #tpu.memory_space<vmem>>, %arg1: memref<64x32xf32, #tpu.memory_space<vmem>>, %arg2: memref<32x32xf32, #tpu.memory_space<vmem>>, %arg3: memref<32x8xf32, #tpu.memory_space<vmem>>, %arg4: memref<1x8xf32, #tpu.memory_space<vmem>>, %arg5: memref<8x32xf32, #tpu.memory_space<vmem>>, %arg6: memref<8x128xf32, #tpu.memory_space<vmem>>) attributes {dimension_semantics = [], scalar_prefetch = 0 : i64, scratch_operands = 0 : i64, tpu.core_type = #tpu.core_type<tc>} {
    %c0 = arith.constant 0 : index
    %c0_0 = arith.constant 0 : index
    %0 = vector.load %arg0[%c0, %c0_0] : memref<384x1xi32, #tpu.memory_space<vmem>>, vector<384x1xi32>
    %c0_1 = arith.constant 0 : index
    %c0_2 = arith.constant 0 : index
    %1 = vector.load %arg1[%c0_1, %c0_2] : memref<64x32xf32, #tpu.memory_space<vmem>>, vector<64x32xf32>
    %c0_3 = arith.constant 0 : index
    %c0_4 = arith.constant 0 : index
    %2 = vector.load %arg2[%c0_3, %c0_4] : memref<32x32xf32, #tpu.memory_space<vmem>>, vector<32x32xf32>
    %c0_5 = arith.constant 0 : index
    %c0_6 = arith.constant 0 : index
    %3 = vector.load %arg3[%c0_5, %c0_6] : memref<32x8xf32, #tpu.memory_space<vmem>>, vector<32x8xf32>
    %c0_7 = arith.constant 0 : index
    %c0_8 = arith.constant 0 : index
    %4 = vector.load %arg4[%c0_7, %c0_8] : memref<1x8xf32, #tpu.memory_space<vmem>>, vector<1x8xf32>
    %c0_9 = arith.constant 0 : index
    %c0_10 = arith.constant 0 : index
    %5 = vector.load %arg5[%c0_9, %c0_10] : memref<8x32xf32, #tpu.memory_space<vmem>>, vector<8x32xf32>
    %6 = tpu.iota {dimensions = array<i32: 1>} : vector<384x64xi32>
    %7 = vector.broadcast %0 : vector<384x1xi32> to vector<384x64xi32>
    %8 = arith.cmpi eq, %7, %6 : vector<384x64xi32>
    %9 = arith.extui %8 : vector<384x64xi1> to vector<384x64xi32>
    %10 = arith.sitofp %9 : vector<384x64xi32> to vector<384x64xf32>
    %11 = arith.truncf %10 : vector<384x64xf32> to vector<384x64xbf16>
    %12 = arith.truncf %1 : vector<64x32xf32> to vector<64x32xbf16>
    %cst = arith.constant dense<0.000000e+00> : vector<384x32xf32>
    %13 = tpu.matmul %11, %12, %cst {dimension_numbers = #tpu.dot_dimension_numbers<[1], [0], [0], [1], [0, 0, 1, 1], [], []>} : vector<384x64xbf16>, vector<64x32xbf16>, vector<384x32xf32> -> vector<384x32xf32>
    %c0_i32 = arith.constant 0 : i32
    %14 = vector.broadcast %c0_i32 : i32 to vector<384x1xi32>
    %15 = arith.cmpi sgt, %0, %14 : vector<384x1xi32>
    %16 = arith.extui %15 : vector<384x1xi1> to vector<384x1xi32>
    %17 = arith.sitofp %16 : vector<384x1xi32> to vector<384x1xf32>
    %18 = tpu.iota {dimensions = array<i32: 0>} : vector<24x384xi32>
    %19 = tpu.iota {dimensions = array<i32: 1>} : vector<24x384xi32>
    %c16_i32 = arith.constant 16 : i32
    %20 = vector.broadcast %c16_i32 : i32 to vector<24x384xi32>
    %21 = arith.muli %18, %20 : vector<24x384xi32>
    %22 = arith.cmpi sge, %19, %21 : vector<24x384xi32>
    %c16_i32_11 = arith.constant 16 : i32
    %23 = vector.broadcast %c16_i32_11 : i32 to vector<24x384xi32>
    %24 = arith.addi %21, %23 : vector<24x384xi32>
    %25 = arith.cmpi slt, %19, %24 : vector<24x384xi32>
    %26 = arith.andi %22, %25 : vector<24x384xi1>
    %27 = arith.extui %26 : vector<24x384xi1> to vector<24x384xi32>
    %28 = arith.sitofp %27 : vector<24x384xi32> to vector<24x384xf32>
    %29 = arith.truncf %28 : vector<24x384xf32> to vector<24x384xbf16>
    %30 = tpu.concatenate %13, %17 in 1 : vector<384x32xf32>, vector<384x1xf32> -> vector<384x33xf32>
    %31 = arith.truncf %30 : vector<384x33xf32> to vector<384x33xbf16>
    %cst_12 = arith.constant dense<0.000000e+00> : vector<24x33xf32>
    %32 = tpu.matmul %29, %31, %cst_12 {dimension_numbers = #tpu.dot_dimension_numbers<[1], [0], [0], [1], [0, 0, 1, 1], [], []>} : vector<24x384xbf16>, vector<384x33xbf16>, vector<24x33xf32> -> vector<24x33xf32>
    %33 = vector.extract_strided_slice %32 {offsets = [0, 0], sizes = [24, 32], strides = [1, 1]} : vector<24x33xf32> to vector<24x32xf32>
    %34 = vector.extract_strided_slice %32 {offsets = [0, 32], sizes = [24, 1], strides = [1, 1]} : vector<24x33xf32> to vector<24x1xf32>
    %cst_13 = arith.constant 9.99999997E-7 : f32
    %35 = vector.broadcast %cst_13 : f32 to vector<24x1xf32>
    %36 = arith.addf %34, %35 : vector<24x1xf32>
    %37 = vector.broadcast %36 : vector<24x1xf32> to vector<24x32xf32>
    %38 = arith.divf %33, %37 : vector<24x32xf32>
    %39 = vector.extract_strided_slice %38 {offsets = [0, 0], sizes = [8, 32], strides = [1, 1]} : vector<24x32xf32> to vector<8x32xf32>
    %40 = vector.extract_strided_slice %38 {offsets = [8, 0], sizes = [16, 32], strides = [1, 1]} : vector<24x32xf32> to vector<16x32xf32>
    %41 = vector.extract_strided_slice %13 {offsets = [0, 0], sizes = [128, 32], strides = [1, 1]} : vector<384x32xf32> to vector<128x32xf32>
    %42 = vector.extract_strided_slice %17 {offsets = [0, 0], sizes = [128, 1], strides = [1, 1]} : vector<384x1xf32> to vector<128x1xf32>
    %43 = arith.truncf %39 : vector<8x32xf32> to vector<8x32xbf16>
    %44 = arith.truncf %2 : vector<32x32xf32> to vector<32x32xbf16>
    %cst_14 = arith.constant dense<0.000000e+00> : vector<8x32xf32>
    %45 = tpu.matmul %43, %44, %cst_14 {dimension_numbers = #tpu.dot_dimension_numbers<[1], [0], [0], [1], [0, 0, 1, 1], [], []>} : vector<8x32xbf16>, vector<32x32xbf16>, vector<8x32xf32> -> vector<8x32xf32>
    %46 = tpu.iota {dimensions = array<i32: 1>} : vector<128x8xi32>
    %47 = tpu.iota {dimensions = array<i32: 0>} : vector<128x8xi32>
    %c16_i32_15 = arith.constant 16 : i32
    %48 = vector.broadcast %c16_i32_15 : i32 to vector<128x8xi32>
    %49 = arith.muli %46, %48 : vector<128x8xi32>
    %50 = arith.cmpi sge, %47, %49 : vector<128x8xi32>
    %c16_i32_16 = arith.constant 16 : i32
    %51 = vector.broadcast %c16_i32_16 : i32 to vector<128x8xi32>
    %52 = arith.addi %49, %51 : vector<128x8xi32>
    %53 = arith.cmpi slt, %47, %52 : vector<128x8xi32>
    %54 = arith.andi %50, %53 : vector<128x8xi1>
    %55 = arith.extui %54 : vector<128x8xi1> to vector<128x8xi32>
    %56 = arith.sitofp %55 : vector<128x8xi32> to vector<128x8xf32>
    %57 = arith.truncf %56 : vector<128x8xf32> to vector<128x8xbf16>
    %58 = arith.truncf %45 : vector<8x32xf32> to vector<8x32xbf16>
    %cst_17 = arith.constant dense<0.000000e+00> : vector<128x32xf32>
    %59 = tpu.matmul %57, %58, %cst_17 {dimension_numbers = #tpu.dot_dimension_numbers<[1], [0], [0], [1], [0, 0, 1, 1], [], []>} : vector<128x8xbf16>, vector<8x32xbf16>, vector<128x32xf32> -> vector<128x32xf32>
    %60 = arith.mulf %41, %59 : vector<128x32xf32>
    %cst_18 = arith.constant dense<0.000000e+00> : vector<128xf32>
    %61 = vector.multi_reduction <add>, %60, %cst_18 [1] : vector<128x32xf32> to vector<128xf32>
    %62 = vector.shape_cast %61 : vector<128xf32> to vector<128x1xf32>
    %cst_19 = arith.constant 8.000000e+01 : f32
    %63 = vector.broadcast %cst_19 : f32 to vector<128x1xf32>
    %64 = arith.cmpf olt, %62, %63 : vector<128x1xf32>
    %cst_20 = arith.constant 0.000000e+00 : f32
    %65 = vector.broadcast %cst_20 : f32 to vector<128x1xf32>
    %66 = arith.select %64, %62, %65 : vector<128x1xi1>, vector<128x1xf32>
    %67 = math.exp %66 : vector<128x1xf32>
    %68 = arith.mulf %67, %42 : vector<128x1xf32>
    %69 = tpu.iota {dimensions = array<i32: 0>} : vector<8x128xi32>
    %70 = tpu.iota {dimensions = array<i32: 1>} : vector<8x128xi32>
    %c16_i32_21 = arith.constant 16 : i32
    %71 = vector.broadcast %c16_i32_21 : i32 to vector<8x128xi32>
    %72 = arith.muli %69, %71 : vector<8x128xi32>
    %73 = arith.cmpi sge, %70, %72 : vector<8x128xi32>
    %c16_i32_22 = arith.constant 16 : i32
    %74 = vector.broadcast %c16_i32_22 : i32 to vector<8x128xi32>
    %75 = arith.addi %72, %74 : vector<8x128xi32>
    %76 = arith.cmpi slt, %70, %75 : vector<8x128xi32>
    %77 = arith.andi %73, %76 : vector<8x128xi1>
    %78 = arith.extui %77 : vector<8x128xi1> to vector<8x128xi32>
    %79 = arith.sitofp %78 : vector<8x128xi32> to vector<8x128xf32>
    %80 = arith.truncf %79 : vector<8x128xf32> to vector<8x128xbf16>
    %81 = vector.broadcast %68 : vector<128x1xf32> to vector<128x32xf32>
    %82 = arith.mulf %41, %81 : vector<128x32xf32>
    %83 = tpu.concatenate %82, %68 in 1 : vector<128x32xf32>, vector<128x1xf32> -> vector<128x33xf32>
    %84 = arith.truncf %83 : vector<128x33xf32> to vector<128x33xbf16>
    %cst_23 = arith.constant dense<0.000000e+00> : vector<8x33xf32>
    %85 = tpu.matmul %80, %84, %cst_23 {dimension_numbers = #tpu.dot_dimension_numbers<[1], [0], [0], [1], [0, 0, 1, 1], [], []>} : vector<8x128xbf16>, vector<128x33xbf16>, vector<8x33xf32> -> vector<8x33xf32>
    %86 = vector.extract_strided_slice %85 {offsets = [0, 0], sizes = [8, 32], strides = [1, 1]} : vector<8x33xf32> to vector<8x32xf32>
    %87 = vector.extract_strided_slice %85 {offsets = [0, 32], sizes = [8, 1], strides = [1, 1]} : vector<8x33xf32> to vector<8x1xf32>
    %cst_24 = arith.constant 9.99999997E-7 : f32
    %88 = vector.broadcast %cst_24 : f32 to vector<8x1xf32>
    %89 = arith.addf %87, %88 : vector<8x1xf32>
    %90 = vector.broadcast %89 : vector<8x1xf32> to vector<8x32xf32>
    %91 = arith.divf %86, %90 : vector<8x32xf32>
    %92 = arith.truncf %91 : vector<8x32xf32> to vector<8x32xbf16>
    %93 = arith.truncf %3 : vector<32x8xf32> to vector<32x8xbf16>
    %cst_25 = arith.constant dense<0.000000e+00> : vector<8x8xf32>
    %94 = tpu.matmul %92, %93, %cst_25 {dimension_numbers = #tpu.dot_dimension_numbers<[1], [0], [0], [1], [0, 0, 1, 1], [], []>} : vector<8x32xbf16>, vector<32x8xbf16>, vector<8x8xf32> -> vector<8x8xf32>
    %95 = vector.broadcast %4 : vector<1x8xf32> to vector<8x8xf32>
    %96 = arith.addf %94, %95 : vector<8x8xf32>
    %cst_26 = arith.constant dense<0xFF800000> : vector<8xf32>
    %97 = vector.multi_reduction <maximumf>, %96, %cst_26 [1] : vector<8x8xf32> to vector<8xf32>
    %98 = vector.shape_cast %97 : vector<8xf32> to vector<8x1xf32>
    %99 = vector.broadcast %98 : vector<8x1xf32> to vector<8x8xf32>
    %100 = arith.subf %96, %99 : vector<8x8xf32>
    %101 = math.exp %100 : vector<8x8xf32>
    %cst_27 = arith.constant dense<0.000000e+00> : vector<8xf32>
    %102 = vector.multi_reduction <add>, %101, %cst_27 [1] : vector<8x8xf32> to vector<8xf32>
    %103 = vector.shape_cast %102 : vector<8xf32> to vector<8x1xf32>
    %104 = vector.broadcast %103 : vector<8x1xf32> to vector<8x8xf32>
    %105 = arith.divf %101, %104 : vector<8x8xf32>
    %106 = arith.truncf %105 : vector<8x8xf32> to vector<8x8xbf16>
    %107 = arith.truncf %5 : vector<8x32xf32> to vector<8x32xbf16>
    %cst_28 = arith.constant dense<0.000000e+00> : vector<8x32xf32>
    %108 = tpu.matmul %106, %107, %cst_28 {dimension_numbers = #tpu.dot_dimension_numbers<[1], [0], [0], [1], [0, 0, 1, 1], [], []>} : vector<8x8xbf16>, vector<8x32xbf16>, vector<8x32xf32> -> vector<8x32xf32>
    %109 = arith.mulf %108, %108 : vector<8x32xf32>
    %cst_29 = arith.constant dense<0.000000e+00> : vector<8xf32>
    %110 = vector.multi_reduction <add>, %109, %cst_29 [1] : vector<8x32xf32> to vector<8xf32>
    %111 = vector.shape_cast %110 : vector<8xf32> to vector<8x1xf32>
    %112 = math.sqrt %111 : vector<8x1xf32>
    %cst_30 = arith.constant 9.99999996E-13 : f32
    %113 = vector.broadcast %cst_30 : f32 to vector<8x1xf32>
    %114 = arith.maximumf %112, %113 : vector<8x1xf32>
    %115 = vector.broadcast %114 : vector<8x1xf32> to vector<8x32xf32>
    %116 = arith.divf %108, %115 : vector<8x32xf32>
    %117 = arith.mulf %91, %91 : vector<8x32xf32>
    %cst_31 = arith.constant dense<0.000000e+00> : vector<8xf32>
    %118 = vector.multi_reduction <add>, %117, %cst_31 [1] : vector<8x32xf32> to vector<8xf32>
    %119 = vector.shape_cast %118 : vector<8xf32> to vector<8x1xf32>
    %120 = math.sqrt %119 : vector<8x1xf32>
    %cst_32 = arith.constant 9.99999996E-13 : f32
    %121 = vector.broadcast %cst_32 : f32 to vector<8x1xf32>
    %122 = arith.maximumf %120, %121 : vector<8x1xf32>
    %123 = vector.broadcast %122 : vector<8x1xf32> to vector<8x32xf32>
    %124 = arith.divf %91, %123 : vector<8x32xf32>
    %125 = arith.mulf %40, %40 : vector<16x32xf32>
    %cst_33 = arith.constant dense<0.000000e+00> : vector<16xf32>
    %126 = vector.multi_reduction <add>, %125, %cst_33 [1] : vector<16x32xf32> to vector<16xf32>
    %127 = vector.shape_cast %126 : vector<16xf32> to vector<16x1xf32>
    %128 = math.sqrt %127 : vector<16x1xf32>
    %cst_34 = arith.constant 9.99999996E-13 : f32
    %129 = vector.broadcast %cst_34 : f32 to vector<16x1xf32>
    %130 = arith.maximumf %128, %129 : vector<16x1xf32>
    %131 = vector.broadcast %130 : vector<16x1xf32> to vector<16x32xf32>
    %132 = arith.divf %40, %131 : vector<16x32xf32>
    %133 = arith.mulf %116, %124 : vector<8x32xf32>
    %cst_35 = arith.constant dense<0.000000e+00> : vector<8xf32>
    %134 = vector.multi_reduction <add>, %133, %cst_35 [1] : vector<8x32xf32> to vector<8xf32>
    %135 = vector.shape_cast %134 : vector<8xf32> to vector<8x1xf32>
    %136 = tpu.iota {dimensions = array<i32: 1>} : vector<16x8xi32>
    %137 = tpu.iota {dimensions = array<i32: 0>} : vector<16x8xi32>
    %c2_i32 = arith.constant 2 : i32
    %138 = vector.broadcast %c2_i32 : i32 to vector<16x8xi32>
    %139 = arith.muli %136, %138 : vector<16x8xi32>
    %140 = arith.cmpi sge, %137, %139 : vector<16x8xi32>
    %c2_i32_36 = arith.constant 2 : i32
    %141 = vector.broadcast %c2_i32_36 : i32 to vector<16x8xi32>
    %142 = arith.addi %139, %141 : vector<16x8xi32>
    %143 = arith.cmpi slt, %137, %142 : vector<16x8xi32>
    %144 = arith.andi %140, %143 : vector<16x8xi1>
    %145 = arith.extui %144 : vector<16x8xi1> to vector<16x8xi32>
    %146 = arith.sitofp %145 : vector<16x8xi32> to vector<16x8xf32>
    %147 = arith.truncf %146 : vector<16x8xf32> to vector<16x8xbf16>
    %148 = tpu.concatenate %116, %135 in 1 : vector<8x32xf32>, vector<8x1xf32> -> vector<8x33xf32>
    %149 = arith.truncf %148 : vector<8x33xf32> to vector<8x33xbf16>
    %cst_37 = arith.constant dense<0.000000e+00> : vector<16x33xf32>
    %150 = tpu.matmul %147, %149, %cst_37 {dimension_numbers = #tpu.dot_dimension_numbers<[1], [0], [0], [1], [0, 0, 1, 1], [], []>} : vector<16x8xbf16>, vector<8x33xbf16>, vector<16x33xf32> -> vector<16x33xf32>
    %cst_38 = arith.constant -1.000000e+00 : f32
    %151 = vector.broadcast %cst_38 : f32 to vector<16x1xf32>
    %152 = tpu.concatenate %132, %151 in 1 : vector<16x32xf32>, vector<16x1xf32> -> vector<16x33xf32>
    %153 = arith.mulf %152, %150 : vector<16x33xf32>
    %cst_39 = arith.constant dense<0.000000e+00> : vector<16xf32>
    %154 = vector.multi_reduction <add>, %153, %cst_39 [1] : vector<16x33xf32> to vector<16xf32>
    %155 = vector.shape_cast %154 : vector<16xf32> to vector<16x1xf32>
    %cst_40 = arith.constant 1.000000e+00 : f32
    %156 = vector.broadcast %cst_40 : f32 to vector<16x1xf32>
    %157 = arith.addf %156, %155 : vector<16x1xf32>
    %cst_41 = arith.constant 0.000000e+00 : f32
    %158 = vector.broadcast %cst_41 : f32 to vector<16x1xf32>
    %159 = arith.maximumf %158, %157 : vector<16x1xf32>
    %cst_42 = arith.constant dense<0.000000e+00> : vector<1xf32>
    %160 = vector.multi_reduction <add>, %159, %cst_42 [0] : vector<16x1xf32> to vector<1xf32>
    %161 = vector.shape_cast %160 : vector<1xf32> to vector<1x1xf32>
    %cst_43 = arith.constant 6.250000e-02 : f32
    %162 = vector.broadcast %cst_43 : f32 to vector<1x1xf32>
    %163 = arith.mulf %161, %162 : vector<1x1xf32>
    %164 = arith.mulf %5, %5 : vector<8x32xf32>
    %cst_44 = arith.constant dense<0.000000e+00> : vector<8xf32>
    %165 = vector.multi_reduction <add>, %164, %cst_44 [1] : vector<8x32xf32> to vector<8xf32>
    %166 = vector.shape_cast %165 : vector<8xf32> to vector<8x1xf32>
    %167 = math.sqrt %166 : vector<8x1xf32>
    %cst_45 = arith.constant 9.99999996E-13 : f32
    %168 = vector.broadcast %cst_45 : f32 to vector<8x1xf32>
    %169 = arith.maximumf %167, %168 : vector<8x1xf32>
    %170 = vector.broadcast %169 : vector<8x1xf32> to vector<8x32xf32>
    %171 = arith.divf %5, %170 : vector<8x32xf32>
    %cst_46 = arith.constant dense<0.000000e+00> : vector<8x8xf32>
    %172 = tpu.matmul %171, %171, %cst_46 {dimension_numbers = #tpu.dot_dimension_numbers<[1], [1], [0], [0], [0, 0, 1, 0], [], []>} : vector<8x32xf32>, vector<8x32xf32>, vector<8x8xf32> -> vector<8x8xf32>
    %173 = tpu.iota {dimensions = array<i32: 0>} : vector<8x8xi32>
    %174 = tpu.iota {dimensions = array<i32: 1>} : vector<8x8xi32>
    %175 = arith.cmpi eq, %173, %174 : vector<8x8xi32>
    %176 = arith.extui %175 : vector<8x8xi1> to vector<8x8xi32>
    %177 = arith.sitofp %176 : vector<8x8xi32> to vector<8x8xf32>
    %178 = arith.subf %172, %177 : vector<8x8xf32>
    %179 = arith.mulf %178, %178 : vector<8x8xf32>
    %cst_47 = arith.constant dense<0.000000e+00> : vector<8xf32>
    %180 = vector.multi_reduction <add>, %179, %cst_47 [1] : vector<8x8xf32> to vector<8xf32>
    %181 = vector.shape_cast %180 : vector<8xf32> to vector<8x1xf32>
    %cst_48 = arith.constant dense<0.000000e+00> : vector<1xf32>
    %182 = vector.multi_reduction <add>, %181, %cst_48 [0] : vector<8x1xf32> to vector<1xf32>
    %183 = vector.shape_cast %182 : vector<1xf32> to vector<1x1xf32>
    %cst_49 = arith.constant 1.000000e+00 : f32
    %184 = vector.broadcast %cst_49 : f32 to vector<8x1xf32>
    %185 = vector.broadcast %163 : vector<1x1xf32> to vector<8x1xf32>
    %186 = arith.mulf %185, %184 : vector<8x1xf32>
    %cst_50 = arith.constant 1.000000e+00 : f32
    %187 = vector.broadcast %cst_50 : f32 to vector<8x1xf32>
    %188 = vector.broadcast %183 : vector<1x1xf32> to vector<8x1xf32>
    %189 = arith.mulf %188, %187 : vector<8x1xf32>
    %cst_51 = arith.constant 0.000000e+00 : f32
    %190 = vector.broadcast %cst_51 : f32 to vector<8x118xf32>
    %191 = tpu.concatenate %105, %186, %189, %190 in 1 : vector<8x8xf32>, vector<8x1xf32>, vector<8x1xf32>, vector<8x118xf32> -> vector<8x128xf32>
    %c0_52 = arith.constant 0 : index
    %c0_53 = arith.constant 0 : index
    %192 = vector.load %arg6[%c0_52, %c0_53] : memref<8x128xf32, #tpu.memory_space<vmem>>, vector<8x128xf32>
    tpu.vector_store %arg6[%c0_52, %c0_53], %191 {strides = array<i32>} : memref<8x128xf32, #tpu.memory_space<vmem>>, vector<8x128xf32>,
    return
  }
}

</mosaic_0001>

<bundles_post_ra>
// kernel: encoder2_forward.1
= control target key start
LH: loop header
LB: loop body
LE: loop exit
PB: predicated region body
PF: predicated region fallthrough
CT: control target
= control target key end

     0   :  { %v3923_v0 = vmov 0   ;;  %v3925_v57 = vmov 0.0   ;;  %s3916_s0 = inlined_call_operand.vmem [shape: s32[384,1], index: 0, kind: input, shape index: {}]   ;;  %s3917_s1 = inlined_call_operand.vmem [shape: f32[64,32], index: 1, kind: input, shape index: {}]   ;;  %s3918_s2 = inlined_call_operand.vmem [shape: f32[32,32], index: 2, kind: input, shape index: {}]   ;;  %s3919_s4 = inlined_call_operand.vmem [shape: f32[1,8], index: 4, kind: input, shape index: {}]   ;;  %s3920_s3 = inlined_call_operand.vmem [shape: f32[32,8], index: 3, kind: input, shape index: {}]   ;;  %s3921_s5 = inlined_call_operand.vmem [shape: f32[8,32], index: 5, kind: input, shape index: {}]   ;;  %s3922_s6 = inlined_call_operand.vmem [shape: f32[8,128], index: 6, kind: output, shape index: {}]  }
   0x1   :  { %2274 = vset.pattern.permute.xlu2 %v3923_v0  ;;  %2273 = vset.pattern.permute.xlu1 %v3923_v0  ;;  %v2550_v1 = vld [vmem:[%s3916_s0 + $0x20] sm:$0xff]  ;;  %v2555_v2 = vld [vmem:[%s3916_s0 + $0x10] sm:$0xff]  ;;  %v2569_v4 = vld [vmem:[%s3916_s0 + $0x28] sm:$0xff] }
   0x2   :  { %v2560_v3 = vld [vmem:[%s3916_s0] sm:$0xff]  ;;  %2272 = vset.pattern.permute.xlu0 %v3923_v0  ;;  %105 = vperm.xlu2 %2274, %v2550_v1   ;;  %v2574_v5 = vld [vmem:[%s3916_s0 + $0x18] sm:$0xff]  ;;  %v2579_v6 = vld [vmem:[%s3916_s0 + $0x8] sm:$0xff] }
   0x3   :  { %99 = vperm.xlu1 %2273, %v2555_v2   ;;  %93 = vperm.xlu0 %2272, %v2560_v3   ;;  %v2587_v7 = vld [vmem:[%s3916_s0 + $0x110] sm:$0xff]  ;;  %v2592_v8 = vld [vmem:[%s3916_s0 + $0x38] sm:$0xff]  ;;  %v2605_v10 = vld [vmem:[%s3916_s0 + $0x48] sm:$0xff] }
   0x4   :  { %v2597_v9 = vld [vmem:[%s3916_s0 + $0x30] sm:$0xff]  ;;  %v2610_v11 = vld [vmem:[%s3916_s0 + $0x40] sm:$0xff]  ;;  %v2615_v12 = vld [vmem:[%s3916_s0 + $0x118] sm:$0xff] }
   0x5   :  { %v2623_v13 = vld [vmem:[%s3916_s0 + $0x50] sm:$0xff]  ;;  %v2628_v14 = vld [vmem:[%s3916_s0 + $0x128] sm:$0xff]  ;;  %v2633_v15 = vld [vmem:[%s3916_s0 + $0x120] sm:$0xff] }
   0x6   :  { %v2641_v16 = vld [vmem:[%s3916_s0 + $0x138] sm:$0xff]  ;;  %v2646_v17 = vld [vmem:[%s3916_s0 + $0x130] sm:$0xff]  ;;  %v2659_v19 = vld [vmem:[%s3916_s0 + $0x140] sm:$0xff] }
   0x7   :  { %v2651_v18 = vld [vmem:[%s3916_s0 + $0x58] sm:$0xff]  ;;  %v2664_v20 = vld [vmem:[%s3916_s0 + $0x68] sm:$0xff]  ;;  %v2669_v21 = vld [vmem:[%s3916_s0 + $0x60] sm:$0xff]  ;;  %vm650_vm4 = vcmp.gt.s32.totalorder %v2659_v19, 0  ;;  %vm649_vm12 = vcmp.gt.s32.totalorder %v2641_v16, 0  ;;  %vm648_vm13 = vcmp.gt.s32.totalorder %v2646_v17, 0 }
   0x8   :  { %v2677_v22 = vld [vmem:[%s3916_s0 + $0x78] sm:$0xff]  ;;  %v2682_v23 = vld [vmem:[%s3916_s0 + $0x70] sm:$0xff]  ;;  %v2687_v24 = vld [vmem:[%s3916_s0 + $0x148] sm:$0xff] }
   0x9   :  { %v2695_v25 = vld [vmem:[%s3916_s0 + $0x150] sm:$0xff]  ;;  %v2700_v26 = vld [vmem:[%s3916_s0 + $0xc8] sm:$0xff]  ;;  %v2705_v27 = vld [vmem:[%s3916_s0 + $0xc0] sm:$0xff]  ;;  %vm651_vm5 = vcmp.gt.s32.totalorder %v2687_v24, 0 }
   0xa   :  { %108 = vperm.xlu2 %2274, %v2569_v4   ;;  %v2713_v28 = vld [vmem:[%s3916_s0 + $0x88] sm:$0xff]  ;;  %v2718_v29 = vld [vmem:[%s3916_s0 + $0x80] sm:$0xff]  ;;  %v2723_v30 = vld [vmem:[%s3916_s0 + $0x158] sm:$0xff]  ;;  %vm652_vm0 = vcmp.gt.s32.totalorder %v2695_v25, 0  ;;  %vm635_vm1 = vcmp.gt.s32.totalorder %v2700_v26, 0  ;;  %vm634_vm2 = vcmp.gt.s32.totalorder %v2705_v27, 0 }
   0xb   :  { %102 = vperm.xlu1 %2273, %v2574_v5   ;;  %96 = vperm.xlu0 %2272, %v2579_v6   ;;  %v78_v31 = vld [vmem:[%s3917_s1 + $0x30] sm:$0xff]  ;;  %v79_v32 = vld [vmem:[%s3917_s1 + $0x38] sm:$0xff]  ;;  %v2737_v33 = vld [vmem:[%s3916_s0 + $0x160] sm:$0xff]  ;;  %vm653_vm3 = vcmp.gt.s32.totalorder %v2723_v30, 0  ;;  %v2821_v58 = vsel %vm652_vm0, 1.0, %v3925_v57  ;;  %v2824_v59 = vsel %vm635_vm1, 1.0, %v3925_v57 }
   0xc   :  { %v407_v34 = vpack.c.bf16 %v79_v32, %v78_v31  ;;  %v2742_v35 = vld [vmem:[%s3916_s0 + $0xd8] sm:$0xff]  ;;  %v2747_v36 = vld [vmem:[%s3916_s0 + $0xd0] sm:$0xff]  ;;  %v76_v37 = vld [vmem:[%s3917_s1 + $0x20] sm:$0xff]  ;;  %v2827_v60 = vsel %vm634_vm2, 1.0, %v3925_v57  ;;  %v2830_v61 = vsel %vm653_vm3, 1.0, %v3925_v57  ;;  %v3924_v31 = vlaneseq }
   0xd   :  { %v77_v38 = vld [vmem:[%s3917_s1 + $0x28] sm:$0xff]  ;;  %v2761_v40 = vld [vmem:[%s3916_s0 + $0x98] sm:$0xff]  ;;  %v74_v41 = vld [vmem:[%s3917_s1 + $0x10] sm:$0xff]  ;;  %vm408_vm0 = vcmask 523264   ;;  %vm637_vm1 = vcmp.gt.s32.totalorder %v2742_v35, 0  ;;  %vm636_vm2 = vcmp.gt.s32.totalorder %v2747_v36, 0 }
   0xe   :  { %485 = vmatpush.bf16.msra.mxu0 %v407_v34  ;;  %2260 = vmatpush.bf16.msra.mxu3 %v407_v34  ;;  %v406_v39 = vpack.c.bf16 %v77_v38, %v76_v37  ;;  %v75_v42 = vld [vmem:[%s3917_s1 + $0x18] sm:$0xff]  ;;  %v2772_v43 = vld [vmem:[%s3916_s0 + $0x90] sm:$0xff]  ;;  %v2777_v44 = vld [vmem:[%s3916_s0 + $0x168] sm:$0xff]  ;;  %v2855_v37 = vsel %vm650_vm4, 1.0, %v3925_v57  ;;  %v2858_v38 = vsel %vm651_vm5, 1.0, %v3925_v57  ;;  %vm625_vm3 = vcmp.gt.s32.totalorder %v2677_v22, 0 }
   0xf   :  { %2259 = vmatpush.bf16.msra.mxu1 %v407_v34  ;;  %v405_v45 = vpack.c.bf16 %v75_v42, %v74_v41  ;;  %v72_v47 = vld [vmem:[%s3917_s1] sm:$0xff]  ;;  %v73_v48 = vld [vmem:[%s3917_s1 + $0x8] sm:$0xff]  ;;  %v70_v50 = vld [vmem:[%s3916_s0 + $0x170] sm:$0xff]  ;;  %v2866_v41 = vand.u32 127, %v3924_v31  ;;  %vm624_vm4 = vcmp.gt.s32.totalorder %v2682_v23, 0  ;;  %vm654_vm5 = vcmp.gt.s32.totalorder %v2737_v33, 0 }
  0x10   :  { %v404_v49 = vpack.c.bf16 %v73_v48, %v72_v47  ;;  %v53_v51 = vld [vmem:[%s3916_s0 + $0xe8] sm:$0xff]  ;;  %v52_v52 = vld [vmem:[%s3916_s0 + $0xe0] sm:$0xff]  ;;  %v71_v56 = vld [vmem:[%s3916_s0 + $0x178] sm:$0xff]  ;;  %vm656_vm6 = vcmp.gt.s32.totalorder %v70_v50, 0 }
  0x11   :  { %v2804_v54 = vld [vmem:[%s3916_s0 + $0xa8] sm:$0xff]  ;;  %v2809_v55 = vld [vmem:[%s3916_s0 + $0xa0] sm:$0xff]  ;;  %v2837_v63 = vld [vmem:[%s3916_s0 + $0xb0] sm:$0xff]  ;;  %vm639_vm7 = vcmp.gt.s32.totalorder %v53_v51, 0  ;;  %vm638_vm8 = vcmp.gt.s32.totalorder %v52_v52, 0  ;;  %vm657_vm9 = vcmp.gt.s32.totalorder %v71_v56, 0 }
  0x12   :  { %195 = vperm.xlu2 %2274, %v2587_v7   ;;  %486 = vmatpush.bf16.msra.mxu0 %v406_v39  ;;  %v2878_v42 = vld [vmem:[%s3916_s0 + $0xb8] sm:$0xff]  ;;  %v2201_v47 = vsel %vm656_vm6, 1.0, %v3925_v57  ;;  %v2184_v48 = vsel %vm639_vm7, 1.0, %v3925_v57  ;;  %vm655_vm6 = vcmp.gt.s32.totalorder %v2777_v44, 0  ;;  %vm629_vm7 = vcmp.gt.s32.totalorder %v2761_v40, 0 }
  0x13   :  { %114 = vperm.xlu1 %2273, %v2592_v8   ;;  %111 = vperm.xlu0 %2272, %v2597_v9  }
  0x14   :  { %2262 = vmatpush.bf16.msra.mxu3 %v406_v39  ;;  %2261 = vmatpush.bf16.msra.mxu1 %v406_v39  ;;  %v2863_v39 = vld [vmem:[%s3916_s0 + $0x108] sm:$0xff] }
  0x16   :  { %487 = vmatpush.bf16.msra.mxu0 %v405_v45 }
  0x18   :  { %2264 = vmatpush.bf16.msra.mxu3 %v405_v45  ;;  %2263 = vmatpush.bf16.msra.mxu1 %v405_v45 }
  0x1a   :  { %120 = vperm.xlu2 %2274, %v2605_v10   ;;  %488 = vmatpush.bf16.msra.mxu0 %v404_v49 }
  0x1b   :  { %117 = vperm.xlu1 %2273, %v2610_v11   ;;  %198 = vperm.xlu0 %2272, %v2615_v12  }
  0x1c   :  { %2266 = vmatpush.bf16.msra.mxu3 %v404_v49  ;;  %2265 = vmatpush.bf16.msra.mxu1 %v404_v49  ;;  %v2183_v49 = vsel %vm638_vm8, 1.0, %v3925_v57  ;;  %vm628_vm8 = vcmp.gt.s32.totalorder %v2772_v43, 0 }
  0x22   :  { %123 = vperm.xlu2 %2274, %v2623_v13  }
  0x23   :  { %204 = vperm.xlu1 %2273, %v2628_v14   ;;  %201 = vperm.xlu0 %2272, %v2633_v15  }
  0x2a   :  { %210 = vperm.xlu2 %2274, %v2641_v16  }
  0x2b   :  { %207 = vperm.xlu1 %2273, %v2646_v17   ;;  %126 = vperm.xlu0 %2272, %v2651_v18   ;;  %v2895_v17 = vsel %vm649_vm12, 1.0, %v3925_v57  ;;  %vm622_vm12 = vcmp.gt.s32.totalorder %v2669_v21, 0 }
  0x32   :  { %213 = vperm.xlu2 %2274, %v2659_v19  }
  0x33   :  { %132 = vperm.xlu1 %2273, %v2664_v20   ;;  %129 = vperm.xlu0 %2272, %v2669_v21  }
  0x3a   :  { %138 = vperm.xlu2 %2274, %v2677_v22   ;;  %v2953_v22 = vsel %vm628_vm8, 1.0, %v3925_v57  ;;  %vm620_vm8 = vcmp.gt.s32.totalorder %v2623_v13, 0  ;;  %v3949_v13 = vpack.i.bf16 %v2830_v61, %v2821_v58 }
  0x3b   :  { %135 = vperm.xlu1 %2273, %v2682_v23   ;;  %216 = vperm.xlu0 %2272, %v2687_v24   ;;  %v2873_v24 = vld [vmem:[%s3916_s0 + $0x100] sm:$0xff] }
  0x42   :  { %219 = vperm.xlu2 %2274, %v2695_v25   ;;  %v55_v25 = vld [vmem:[%s3916_s0 + $0xf8] sm:$0xff] }
  0x43   :  { %168 = vperm.xlu1 %2273, %v2700_v26   ;;  %165 = vperm.xlu0 %2272, %v2705_v27   ;;  %v54_v26 = vld [vmem:[%s3916_s0 + $0xf0] sm:$0xff]  ;;  %v2315_v27 = vpack.i.bf16 %v2824_v59, %v2827_v60  ;;  %vm641_vm10 = vcmp.gt.s32.totalorder %v55_v25, 0  ;;  %s2507_s0 = smov 32  }
  0x44   :  { %vm640_vm11 = vcmp.gt.s32.totalorder %v54_v26, 0  ;;  %v2186_v16 = vsel %vm641_vm10, 1.0, %v3925_v57  ;;  %vm646_vm10 = vcmp.gt.s32.totalorder %v2633_v15, 0  ;;  %v2199_v15 = vsel %vm654_vm5, 1.0, %v3925_v57 }
  0x4a   :  { %144 = vperm.xlu2 %2274, %v2713_v28  }
  0x4b   :  { %141 = vperm.xlu1 %2273, %v2718_v29   ;;  %222 = vperm.xlu0 %2272, %v2723_v30  }
  0x52   :  { %225 = vperm.xlu2 %2274, %v2737_v33  }
  0x53   :  { %174 = vperm.xlu1 %2273, %v2742_v35   ;;  %171 = vperm.xlu0 %2272, %v2747_v36   ;;  %v2200_v35 = vsel %vm655_vm6, 1.0, %v3925_v57  ;;  %v2948_v36 = vsel %vm629_vm7, 1.0, %v3925_v57  ;;  %vm632_vm6 = vcmp.gt.s32.totalorder %v2837_v63, 0  ;;  %vm633_vm7 = vcmp.gt.s32.totalorder %v2878_v42, 0 }
  0x5a   :  { %150 = vperm.xlu2 %2274, %v2761_v40  }
  0x5b   :  { %147 = vperm.xlu1 %2273, %v2772_v43   ;;  %228 = vperm.xlu0 %2272, %v2777_v44   ;;  %v2963_v44 = vsel %vm646_vm10, 1.0, %v3925_v57  ;;  %v2360_v43 = vpack.i.bf16 %v2948_v36, %v2953_v22  ;;  %vm619_vm10 = vcmp.gt.s32.totalorder %v2605_v10, 0  ;;  %v3952_v10 = vpack.i.bf16 %v2858_v38, %v2855_v37 }
  0x5c   :  { %v2782_v46 = vpop.permute.xlu2 %105 }
  0x62   :  { %231 = vperm.xlu2 %2274, %v70_v50   ;;  %v2202_v50 = vsel %vm657_vm9, 1.0, %v3925_v57  ;;  %vm647_vm9 = vcmp.gt.s32.totalorder %v2628_v14, 0  ;;  %v2937_v14 = vsel %vm624_vm4, 1.0, %v3925_v57  ;;  %vm626_vm4 = vcmp.gt.s32.totalorder %v2718_v29, 0 }
  0x63   :  { %180 = vperm.xlu1 %2273, %v53_v51   ;;  %177 = vperm.xlu0 %2272, %v52_v52   ;;  %v2185_v51 = vsel %vm640_vm11, 1.0, %v3925_v57  ;;  %v2280_v45 = vpack.i.bf16 %v2202_v50, %v2201_v47  ;;  %v2181_v47 = vsel %vm636_vm2, 1.0, %v3925_v57  ;;  %3946 = vst [vmem:[#allocation3_spill] sm:$0xff] %v2937_v14  ;;  %v2295_v50 = vpack.i.bf16 %v2200_v35, %v2199_v15 }
  0x64   :  { %v2799_v53 = vpop.permute.xlu2 %108  ;;  %v2275_v30 = vpack.i.bf16 %v2186_v16, %v2185_v51  ;;  %vm623_vm11 = vcmp.gt.s32.totalorder %v2664_v20, 0  ;;  %vm645_vm2 = vcmp.gt.s32.totalorder %v2615_v12, 0 }
  0x65   :  { %v2985_v20 = vsel %vm623_vm11, 1.0, %v3925_v57  ;;  %vm618_vm11 = vcmp.gt.s32.totalorder %v2610_v11, 0  ;;  %v3062_v11 = vsel %vm619_vm10, 1.0, %v3925_v57 }
  0x66   :  { %3947 = vst [vmem:[#allocation4_spill] sm:$0xff] %v2985_v20 }
  0x67   :  { %3953 = vst [vmem:[#allocation8_spill] sm:$0xff] %v3062_v11 }
  0x6a   :  { %156 = vperm.xlu2 %2274, %v2804_v54  }
  0x6b   :  { %153 = vperm.xlu1 %2273, %v2809_v55   ;;  %234 = vperm.xlu0 %2272, %v71_v56  }
  0x6c   :  { %v2832_v62 = vpop.permute.xlu2 %195 }
  0x72   :  { %159 = vperm.xlu2 %2274, %v2837_v63   ;;  %v2178_v63 = vsel %vm633_vm7, 1.0, %v3925_v57 }
  0x73   :  { %186 = vperm.xlu1 %2273, %v55_v25   ;;  %183 = vperm.xlu0 %2272, %v54_v26   ;;  %v2900_v25 = vsel %vm648_vm13, 1.0, %v3925_v57  ;;  %v2285_v26 = vpack.i.bf16 %v2184_v48, %v2183_v49  ;;  %v2932_v49 = vsel %vm625_vm3, 1.0, %v3925_v57  ;;  %vm270_vm13 = vcmp.eq.s32.totalorder %v2832_v62, %v2866_v41 }
  0x74   :  { %v2868_v19 = vpop.permute.xlu2 %120  ;;  %3945 = vst [vmem:[#allocation2_spill] sm:$0xff] %v2932_v49  ;;  %v2290_v40 = vpack.i.bf16 %v2932_v49, %v2937_v14  ;;  %vm627_vm3 = vcmp.gt.s32.totalorder %v2713_v28, 0  ;;  %v2992_v62 = vsel %vm622_vm12, 1.0, %v3925_v57  ;;  %v3004_v28 = vsel %vm645_vm2, 1.0, %v3925_v57 }
  0x75   :  { %v2852_v32 = vpop.permute.xlu1 %99  ;;  %v94_v34 = vpop.permute.xlu0 %93  ;;  %3948 = vst [vmem:[#allocation5_spill] sm:$0xff] %v2992_v62  ;;  %v3007_v29 = vsel %vm627_vm3, 1.0, %v3925_v57  ;;  %v2305_v15 = vpack.i.bf16 %v2985_v20, %v2992_v62  ;;  %vm631_vm12 = vcmp.gt.s32.totalorder %v2804_v54, 0  ;;  %v3065_v54 = vsel %vm618_vm11, 1.0, %v3925_v57 }
  0x76   :  { %vm236_vm14 = vcmp.eq.s32.totalorder %v94_v34, %v2866_v41  ;;  %3954 = vst [vmem:[#allocation9_spill] sm:$0xff] %v3065_v54  ;;  %vm617_vm3 = vcmp.gt.s32.totalorder %v2592_v8, 0  ;;  %vm610_vm11 = vcmp.gt.s32.totalorder %v2560_v3, 0 }
  0x77   :  { %v2083_v0 = vsel %vm236_vm14, 1.0, %v3925_v57  ;;  %vm238_vm14 = vcmp.eq.s32.totalorder %v2852_v32, %v2866_v41  ;;  %v3151_v3 = vsel %vm610_vm11, 1.0, %v3925_v57 }
  0x78   :  { %v2085_v32 = vsel %vm238_vm14, 1.0, %v3925_v57  ;;  %vm240_vm14 = vcmp.eq.s32.totalorder %v2782_v46, %v2866_v41  ;;  %v2176_v46 = vsel %vm631_vm12, 1.0, %v3925_v57  ;;  %vm611_vm12 = vcmp.gt.s32.totalorder %v2579_v6, 0  ;;  %3959 = vst [vmem:[#allocation14_spill] sm:$0xff] %v3151_v3 }
  0x7a   :  { %192 = vperm.xlu2 %2274, %v2863_v39  }
  0x7b   :  { %189 = vperm.xlu1 %2273, %v2873_v24   ;;  %162 = vperm.xlu0 %2272, %v2878_v42   ;;  %v3037_v42 = vsel %vm620_vm8, 1.0, %v3925_v57 }
  0x7c   :  { %v2913_v48 = vpop.permute.xlu2 %123  ;;  %3950 = vst [vmem:[#allocation6_spill] sm:$0xff] %v3037_v42 }
  0x7d   :  { %v2897_v52 = vpop.permute.xlu1 %102  ;;  %v97_v56 = vpop.permute.xlu0 %96 }
  0x7e   :  { %vm237_vm15 = vcmp.eq.s32.totalorder %v97_v56, %v2866_v41 }
  0x7f   :  { %v2084_v31 = vsel %vm237_vm15, 1.0, %v3925_v57  ;;  %vm239_vm15 = vcmp.eq.s32.totalorder %v2897_v52, %v2866_v41 }
  0x80   :  { %v380_v34 = vpack.c.bf16 %v2084_v31, %v2083_v0  ;;  %v2340_v0 = vpack.i.bf16 %v2895_v17, %v2900_v25  ;;  %v2182_v31 = vsel %vm637_vm1, 1.0, %v3925_v57  ;;  %vm644_vm1 = vcmp.gt.s32.totalorder %v2587_v7, 0 }
  0x81   :  { %v2300_v33 = vpack.i.bf16 %v2182_v31, %v2181_v47  ;;  %v2117_v7 = vsel %vm270_vm13, 1.0, %v3925_v57  ;;  %v2086_v51 = vsel %vm239_vm15, 1.0, %v3925_v57  ;;  %v3000_v56 = vsel %vm644_vm1, 1.0, %v3925_v57 }
  0x82   :  { %2131 = vmatmul.msk.bf16.vlgmr.msra.gmra.mxu0 %vm408_vm0, %v380_v34  ;;  %2286 = vrot.lane.b32.xlu2 %v2285_v26, %s2507_s0  ;;  %v3010_v26 = vsel %vm626_vm4, 1.0, %v3925_v57  ;;  %v381_v31 = vpack.c.bf16 %v2086_v51, %v2085_v32  ;;  %vm630_vm13 = vcmp.gt.s32.totalorder %v2809_v55, 0  ;;  %vm241_vm15 = vcmp.eq.s32.totalorder %v2799_v53, %v2866_v41 }
  0x83   :  { %2281 = vrot.lane.b32.xlu1 %v2280_v45, %s2507_s0  ;;  %2276 = vrot.lane.b32.xlu0 %v2275_v30, %s2507_s0  ;;  %v2960_v45 = vsel %vm647_vm9, 1.0, %v3925_v57  ;;  %vm621_vm9 = vcmp.gt.s32.totalorder %v2651_v18, 0  ;;  %v2375_v35 = vpack.i.bf16 %v3007_v29, %v3010_v26  ;;  %v2177_v18 = vsel %vm632_vm6, 1.0, %v3925_v57 }
  0x84   :  { %v2355_v16 = vpack.i.bf16 %v2960_v45, %v2963_v44  ;;  %v2989_v21 = vpop.permute.xlu2 %210  ;;  %v2175_v53 = vsel %vm630_vm13, 1.0, %v3925_v57  ;;  %v2087_v55 = vsel %vm240_vm14, 1.0, %v3925_v57  ;;  %v2088_v61 = vsel %vm241_vm15, 1.0, %v3925_v57 }
  0x85   :  { %v2955_v23 = vpop.permute.xlu1 %114  ;;  %v2957_v30 = vpop.permute.xlu0 %111  ;;  %v2345_v51 = vpack.i.bf16 %v2176_v46, %v2175_v53  ;;  %vm616_vm4 = vcmp.gt.s32.totalorder %v2597_v9, 0  ;;  %vm615_vm6 = vcmp.gt.s32.totalorder %v2569_v4, 0  ;;  %vm275_vm10 = vcmp.eq.s32.totalorder %v2989_v21, %v2866_v41 }
  0x86   :  { %v3094_v8 = vsel %vm616_vm4, 1.0, %v3925_v57  ;;  %vm243_vm7 = vcmp.eq.s32.totalorder %v2955_v23, %v2866_v41  ;;  %vm242_vm8 = vcmp.eq.s32.totalorder %v2957_v30, %v2866_v41  ;;  %v3126_v4 = vsel %vm615_vm6, 1.0, %v3925_v57 }
  0x87   :  { %3956 = vst [vmem:[#allocation11_spill] sm:$0xff] %v3094_v8  ;;  %v2090_v25 = vsel %vm243_vm7, 1.0, %v3925_v57  ;;  %v2122_v30 = vsel %vm275_vm10, 1.0, %v3925_v57  ;;  %vm612_vm13 = vcmp.gt.s32.totalorder %v2555_v2, 0  ;;  %vm613_vm14 = vcmp.gt.s32.totalorder %v2574_v5, 0 }
  0x88   :  { %3958 = vst [vmem:[#allocation13_spill] sm:$0xff] %v3126_v4  ;;  %v3154_v2 = vsel %vm611_vm12, 1.0, %v3925_v57  ;;  %v3160_v6 = vsel %vm612_vm13, 1.0, %v3925_v57  ;;  %vm246_vm10 = vcmp.eq.s32.totalorder %v2913_v48, %v2866_v41 }
  0x89   :  { %3960 = vst [vmem:[#allocation15_spill] sm:$0xff] %v3154_v2  ;;  %v2390_v26 = vpack.i.bf16 %v3154_v2, %v3151_v3 }
  0x8a   :  { %2301 = vrot.lane.b32.xlu2 %v2300_v33, %s2507_s0  ;;  %v2370_v33 = vpack.i.bf16 %v3004_v28, %v3000_v56  ;;  %3961 = vst [vmem:[#allocation16_spill] sm:$0xff] %v3160_v6 }
  0x8b   :  { %2296 = vrot.lane.b32.xlu1 %v2295_v50, %s2507_s0  ;;  %2291 = vrot.lane.b32.xlu0 %v2290_v40, %s2507_s0  ;;  %v3040_v50 = vsel %vm621_vm9, 1.0, %v3925_v57 }
  0x8c   :  { %3951 = vst [vmem:[#allocation7_spill] sm:$0xff] %v3040_v50  ;;  %v3042_v60 = vpop.permute.xlu2 %213  ;;  %v2320_v58 = vpack.i.bf16 %v3040_v50, %v3037_v42 }
  0x8d   :  { %v2997_v52 = vpop.permute.xlu1 %117  ;;  %v199_v12 = vpop.permute.xlu0 %198 }
  0x8e   :  { %vm271_vm5 = vcmp.eq.s32.totalorder %v199_v12, %v2866_v41  ;;  %v382_v12 = vpack.c.bf16 %v2088_v61, %v2087_v55 }
  0x8f   :  { %v2118_v34 = vsel %vm271_vm5, 1.0, %v3925_v57  ;;  %vm614_vm5 = vcmp.gt.s32.totalorder %v2550_v1, 0 }
  0x90   :  { %v397_v47 = vpack.c.bf16 %v2118_v34, %v2117_v7  ;;  %v3120_v1 = vsel %vm614_vm5, 1.0, %v3925_v57  ;;  %vm276_vm5 = vcmp.eq.s32.totalorder %v3042_v60, %v2866_v41 }
  0x91   :  { %3957 = vst [vmem:[#allocation12_spill] sm:$0xff] %v3120_v1 }
  0x92   :  { %2132 = vmatmul.msk.bf16.gmra.mxu0 %vm408_vm0, %v381_v31  ;;  %2148 = vmatmul.msk.bf16.vlgmr.msra.gmra.mxu3 %vm408_vm0, %v397_v47  ;;  %v2335_v47 = vpack.i.bf16 %v3062_v11, %v3065_v54 }
  0x93   :  { %2316 = vrot.lane.b32.xlu2 %v2315_v27, %s2507_s0  ;;  %2311 = vrot.lane.b32.xlu1 %v3949_v13, %s2507_s0  ;;  %v2330_v27 = vpack.i.bf16 %v2178_v63, %v2177_v18 }
  0x94   :  { %2306 = vrot.lane.b32.xlu0 %v2305_v15, %s2507_s0  ;;  %v3076_v34 = vpop.permute.xlu2 %138  ;;  %v3091_v15 = vsel %vm617_vm3, 1.0, %v3925_v57  ;;  %vm244_vm3 = vcmp.eq.s32.totalorder %v2997_v52, %v2866_v41 }
  0x95   :  { %v205_v40 = vpop.permute.xlu1 %204  ;;  %v202_v59 = vpop.permute.xlu0 %201  ;;  %3955 = vst [vmem:[#allocation10_spill] sm:$0xff] %v3091_v15  ;;  %v2350_v18 = vpack.i.bf16 %v3091_v15, %v3094_v8 }
  0x96   :  { %vm273_vm1 = vcmp.eq.s32.totalorder %v205_v40, %v2866_v41  ;;  %vm272_vm2 = vcmp.eq.s32.totalorder %v202_v59, %v2866_v41  ;;  %v2091_v40 = vsel %vm244_vm3, 1.0, %v3925_v57  ;;  %vm642_vm3 = vcmp.gt.s32.totalorder %v2873_v24, 0 }
  0x97   :  { %v2120_v7 = vsel %vm273_vm1, 1.0, %v3925_v57  ;;  %v2119_v37 = vsel %vm272_vm2, 1.0, %v3925_v57  ;;  %vm245_vm2 = vcmp.eq.s32.totalorder %v2868_v19, %v2866_v41 }
  0x98   :  { %v398_v31 = vpack.c.bf16 %v2120_v7, %v2119_v37  ;;  %v2092_v63 = vsel %vm245_vm2, 1.0, %v3925_v57  ;;  %vm643_vm2 = vcmp.gt.s32.totalorder %v2863_v39, 0 }
  0x9b   :  { %2331 = vrot.lane.b32.xlu2 %v2330_v27, %s2507_s0  ;;  %2326 = vrot.lane.b32.xlu1 %v3952_v10, %s2507_s0  ;;  %v384_v10 = vpack.c.bf16 %v2092_v63, %v2091_v40 }
  0x9c   :  { %2321 = vrot.lane.b32.xlu0 %v2320_v58, %s2507_s0  ;;  %v3108_v17 = vpop.permute.xlu2 %219  ;;  %v2123_v58 = vsel %vm276_vm5, 1.0, %v3925_v57 }
  0x9d   :  { %v208_v38 = vpop.permute.xlu1 %207  ;;  %v3074_v32 = vpop.permute.xlu0 %126  ;;  %vm278_vm11 = vcmp.eq.s32.totalorder %v3108_v17, %v2866_v41 }
  0x9e   :  { %vm274_vm9 = vcmp.eq.s32.totalorder %v208_v38, %v2866_v41 }
  0x9f   :  { %v2121_v36 = vsel %vm274_vm9, 1.0, %v3925_v57 }
  0xa0   :  { %v399_v44 = vpack.c.bf16 %v2122_v30, %v2121_v36 }
  0xa2   :  { %2133 = vmatmul.msk.bf16.gmra.mxu0 %vm408_vm0, %v382_v12  ;;  %2149 = vmatmul.msk.bf16.gmra.mxu3 %vm408_vm0, %v398_v31 }
  0xa3   :  { %2346 = vrot.lane.b32.xlu2 %v2345_v51, %s2507_s0  ;;  %2341 = vrot.lane.b32.xlu1 %v2340_v0, %s2507_s0  ;;  %v2089_v0 = vsel %vm242_vm8, 1.0, %v3925_v57  ;;  %vm247_vm8 = vcmp.eq.s32.totalorder %v3074_v32, %v2866_v41  ;;  %v2125_v32 = vsel %vm278_vm11, 1.0, %v3925_v57 }
  0xa4   :  { %2336 = vrot.lane.b32.xlu0 %v2335_v47, %s2507_s0  ;;  %v383_v45 = vpack.c.bf16 %v2090_v25, %v2089_v0  ;;  %v3156_v5 = vpop.permute.xlu2 %144  ;;  %v2094_v38 = vsel %vm247_vm8, 1.0, %v3925_v57  ;;  %v2093_v47 = vsel %vm246_vm10, 1.0, %v3925_v57 }
  0xa5   :  { %v3096_v9 = vpop.permute.xlu1 %132  ;;  %v3098_v13 = vpop.permute.xlu0 %129 }
  0xab   :  { %2361 = vrot.lane.b32.xlu2 %v2360_v43, %s2507_s0  ;;  %2356 = vrot.lane.b32.xlu1 %v2355_v16, %s2507_s0  ;;  %v2365_v43 = vpack.i.bf16 %v3126_v4, %v3120_v1  ;;  %v3163_v16 = vsel %vm613_vm14, 1.0, %v3925_v57  ;;  %vm249_vm14 = vcmp.eq.s32.totalorder %v3096_v9, %v2866_v41 }
  0xac   :  { %2351 = vrot.lane.b32.xlu0 %v2350_v18, %s2507_s0  ;;  %3962 = vst [vmem:[#allocation17_spill] sm:$0xff] %v3163_v16  ;;  %v226_v27 = vpop.permute.xlu2 %225  ;;  %v385_v18 = vpack.c.bf16 %v2094_v38, %v2093_v47 }
  0xad   :  { %v3131_v22 = vpop.permute.xlu1 %135  ;;  %v217_v23 = vpop.permute.xlu0 %216 }
  0xae   :  { %vm277_vm4 = vcmp.eq.s32.totalorder %v217_v23, %v2866_v41 }
  0xaf   :  { %v2124_v19 = vsel %vm277_vm4, 1.0, %v3925_v57  ;;  %vm280_vm4 = vcmp.eq.s32.totalorder %v226_v27, %v2866_v41 }
  0xb0   :  { %v400_v46 = vpack.c.bf16 %v2124_v19, %v2123_v58  ;;  %v2127_v39 = vsel %vm280_vm4, 1.0, %v3925_v57  ;;  %vm1009_vm4 = vcmask 261120  }
  0xb2   :  { %2134 = vmatmul.msk.bf16.gmra.mxu0 %vm408_vm0, %v383_v45  ;;  %2150 = vmatmul.msk.bf16.gmra.mxu3 %vm408_vm0, %v399_v44  ;;  %v2096_v44 = vsel %vm249_vm14, 1.0, %v3925_v57  ;;  %vm253_vm14 = vcmp.eq.s32.totalorder %v3156_v5, %v2866_v41 }
  0xb3   :  { %2376 = vrot.lane.b32.xlu2 %v2375_v35, %s2507_s0  ;;  %2371 = vrot.lane.b32.xlu1 %v2370_v33, %s2507_s0  ;;  %v2380_v33 = vpack.i.bf16 %v3163_v16, %v3160_v6  ;;  %v2100_v47 = vsel %vm253_vm14, 1.0, %v3925_v57 }
  0xb4   :  { %2366 = vrot.lane.b32.xlu0 %v2365_v43, %s2507_s0  ;;  %v3195_v7 = vpop.permute.xlu2 %150 }
  0xb5   :  { %v169_v21 = vpop.permute.xlu1 %168  ;;  %v166_v29 = vpop.permute.xlu0 %165 }
  0xb6   :  { %vm261_vm15 = vcmp.eq.s32.totalorder %v169_v21, %v2866_v41  ;;  %vm260_vm1 = vcmp.eq.s32.totalorder %v166_v29, %v2866_v41  ;;  %v2188_v29 = vsel %vm643_vm2, 1.0, %v3925_v57 }
  0xb7   :  { %v2108_v56 = vsel %vm261_vm15, 1.0, %v3925_v57  ;;  %v2107_v28 = vsel %vm260_vm1, 1.0, %v3925_v57  ;;  %vm248_vm15 = vcmp.eq.s32.totalorder %v3098_v13, %v2866_v41 }
  0xb8   :  { %v392_v35 = vpack.c.bf16 %v2108_v56, %v2107_v28  ;;  %v2095_v43 = vsel %vm248_vm15, 1.0, %v3925_v57  ;;  %v2187_v56 = vsel %vm642_vm3, 1.0, %v3925_v57 }
  0xb9   :  { %v386_v24 = vpack.c.bf16 %v2096_v44, %v2095_v43 }
  0xba   :  { %2143 = vmatmul.msk.bf16.vlgmr.msra.gmra.mxu1 %vm408_vm0, %v392_v35 }
  0xbb   :  { %2391 = vrot.lane.b32.xlu2 %v2390_v26, %s2507_s0  ;;  %v2385_v26 = vpack.i.bf16 %v2188_v29, %v2187_v56 }
  0xbc   :  { %2381 = vrot.lane.b32.xlu0 %v2380_v33, %s2507_s0  ;;  %v232_v0 = vpop.permute.xlu2 %231 }
  0xbd   :  { %v3186_v59 = vpop.permute.xlu1 %141  ;;  %v223_v52 = vpop.permute.xlu0 %222  ;;  %2386 = vrot.lane.b32.xlu1 %v2385_v26, %s2507_s0  ;;  %vm282_vm10 = vcmp.eq.s32.totalorder %v232_v0, %v2866_v41 }
  0xbe   :  { %vm279_vm9 = vcmp.eq.s32.totalorder %v223_v52, %v2866_v41 }
  0xbf   :  { %v2126_v51 = vsel %vm279_vm9, 1.0, %v3925_v57  ;;  %vm251_vm9 = vcmp.eq.s32.totalorder %v3076_v34, %v2866_v41 }
  0xc0   :  { %v401_v25 = vpack.c.bf16 %v2126_v51, %v2125_v32 }
  0xc2   :  { %2135 = vmatmul.msk.bf16.gmra.mxu0 %vm408_vm0, %v384_v10  ;;  %2151 = vmatmul.msk.bf16.gmra.mxu3 %vm408_vm0, %v400_v46  ;;  %v2098_v46 = vsel %vm251_vm9, 1.0, %v3925_v57 }
  0xc4   :  { %v3226_v45 = vpop.permute.xlu2 %156 }
  0xc5   :  { %v175_v60 = vpop.permute.xlu1 %174  ;;  %v172_v53 = vpop.permute.xlu0 %171  ;;  %vm257_vm3 = vcmp.eq.s32.totalorder %v3226_v45, %v2866_v41 }
  0xc6   :  { %vm263_vm6 = vcmp.eq.s32.totalorder %v175_v60, %v2866_v41  ;;  %vm262_vm7 = vcmp.eq.s32.totalorder %v172_v53, %v2866_v41  ;;  %v2129_v60 = vsel %vm282_vm10, 1.0, %v3925_v57 }
  0xc7   :  { %v2110_v55 = vsel %vm263_vm6, 1.0, %v3925_v57  ;;  %v2109_v61 = vsel %vm262_vm7, 1.0, %v3925_v57  ;;  %vm250_vm7 = vcmp.eq.s32.totalorder %v3131_v22, %v2866_v41 }
  0xc8   :  { %v393_v37 = vpack.c.bf16 %v2110_v55, %v2109_v61  ;;  %v2097_v27 = vsel %vm250_vm7, 1.0, %v3925_v57 }
  0xc9   :  { %v387_v53 = vpack.c.bf16 %v2098_v46, %v2097_v27 }
  0xca   :  { %2144 = vmatmul.msk.bf16.gmra.mxu1 %vm408_vm0, %v393_v37 }
  0xcc   :  { %v3241_v63 = vpop.permute.xlu2 %159 }
  0xcd   :  { %v3207_v12 = vpop.permute.xlu1 %147  ;;  %v229_v31 = vpop.permute.xlu0 %228 }
  0xce   :  { %vm281_vm1 = vcmp.eq.s32.totalorder %v229_v31, %v2866_v41  ;;  %vm254_vm15 = vcmp.eq.s32.totalorder %v3207_v12, %v2866_v41 }
  0xcf   :  { %v2128_v9 = vsel %vm281_vm1, 1.0, %v3925_v57  ;;  %vm255_vm1 = vcmp.eq.s32.totalorder %v3195_v7, %v2866_v41  ;;  %v2101_v5 = vsel %vm254_vm15, 1.0, %v3925_v57 }
  0xd0   :  { %v402_v28 = vpack.c.bf16 %v2128_v9, %v2127_v39  ;;  %v2104_v9 = vsel %vm257_vm3, 1.0, %v3925_v57 }
  0xd2   :  { %2136 = vmatmul.msk.bf16.gmra.mxu0 %vm408_vm0, %v385_v18  ;;  %2152 = vmatmul.msk.bf16.gmra.mxu3 %vm408_vm0, %v401_v25 }
  0xd4   :  { %v193_v55 = vpop.permute.xlu2 %192 }
  0xd5   :  { %v181_v48 = vpop.permute.xlu1 %180  ;;  %v178_v17 = vpop.permute.xlu0 %177 }
  0xd6   :  { %vm265_vm12 = vcmp.eq.s32.totalorder %v181_v48, %v2866_v41  ;;  %vm264_vm13 = vcmp.eq.s32.totalorder %v178_v17, %v2866_v41  ;;  %v2102_v48 = vsel %vm255_vm1, 1.0, %v3925_v57 }
  0xd7   :  { %v2112_v36 = vsel %vm265_vm12, 1.0, %v3925_v57  ;;  %v2111_v23 = vsel %vm264_vm13, 1.0, %v3925_v57  ;;  %vm269_vm12 = vcmp.eq.s32.totalorder %v193_v55, %v2866_v41  ;;  %vm252_vm13 = vcmp.eq.s32.totalorder %v3186_v59, %v2866_v41 }
  0xd8   :  { %v394_v30 = vpack.c.bf16 %v2112_v36, %v2111_v23  ;;  %v2116_v37 = vsel %vm269_vm12, 1.0, %v3925_v57  ;;  %v2099_v51 = vsel %vm252_vm13, 1.0, %v3925_v57  ;;  %v389_v36 = vpack.c.bf16 %v2102_v48, %v2101_v5 }
  0xd9   :  { %v388_v18 = vpack.c.bf16 %v2100_v47, %v2099_v51 }
  0xda   :  { %2145 = vmatmul.msk.bf16.gmra.mxu1 %vm408_vm0, %v394_v30 }
  0xdd   :  { %v3231_v21 = vpop.permute.xlu1 %153  ;;  %v235_v13 = vpop.permute.xlu0 %234 }
  0xde   :  { %vm283_vm8 = vcmp.eq.s32.totalorder %v235_v13, %v2866_v41  ;;  %vm256_vm2 = vcmp.eq.s32.totalorder %v3231_v21, %v2866_v41 }
  0xdf   :  { %v2130_v58 = vsel %vm283_vm8, 1.0, %v3925_v57  ;;  %v2103_v7 = vsel %vm256_vm2, 1.0, %v3925_v57 }
  0xe0   :  { %v403_v22 = vpack.c.bf16 %v2130_v58, %v2129_v60  ;;  %v390_v29 = vpack.c.bf16 %v2104_v9, %v2103_v7  ;;  %v2287_v7 = vpop.permute.xlu2 %2286 }
  0xe1   :  { %v2289_v8 = vunpack.i.h.bf16 %v2287_v7  ;;  %v2288_v14 = vunpack.i.l.bf16 %v2287_v7 }
  0xe2   :  { %2137 = vmatmul.msk.bf16.gmra.mxu0 %vm408_vm0, %v386_v24  ;;  %2153 = vmatmul.msk.bf16.gmra.mxu3 %vm408_vm0, %v402_v28 }
  0xe5   :  { %v187_v35 = vpop.permute.xlu1 %186  ;;  %v184_v33 = vpop.permute.xlu0 %183 }
  0xe6   :  { %vm267_vm5 = vcmp.eq.s32.totalorder %v187_v35, %v2866_v41  ;;  %vm266_vm6 = vcmp.eq.s32.totalorder %v184_v33, %v2866_v41 }
  0xe7   :  { %v2114_v40 = vsel %vm267_vm5, 1.0, %v3925_v57  ;;  %v2113_v19 = vsel %vm266_vm6, 1.0, %v3925_v57  ;;  %vm258_vm6 = vcmp.eq.s32.totalorder %v3241_v63, %v2866_v41 }
  0xe8   :  { %v395_v52 = vpack.c.bf16 %v2114_v40, %v2113_v19  ;;  %v2105_v46 = vsel %vm258_vm6, 1.0, %v3925_v57 }
  0xea   :  { %2146 = vmatmul.msk.bf16.gmra.mxu1 %vm408_vm0, %v395_v52 }
  0xed   :  { %v190_v10 = vpop.permute.xlu1 %189  ;;  %v163_v26 = vpop.permute.xlu0 %162 }
  0xee   :  { %vm268_vm11 = vcmp.eq.s32.totalorder %v190_v10, %v2866_v41  ;;  %vm259_vm5 = vcmp.eq.s32.totalorder %v163_v26, %v2866_v41 }
  0xef   :  { %v2115_v34 = vsel %vm268_vm11, 1.0, %v3925_v57  ;;  %v2106_v52 = vsel %vm259_vm5, 1.0, %v3925_v57 }
  0xf0   :  { %v396_v38 = vpack.c.bf16 %v2116_v37, %v2115_v34 }
  0xf2   :  { %2138 = vmatmul.msk.bf16.gmra.mxu0 %vm408_vm0, %v387_v53  ;;  %2154 = vmatmul.msk.bf16.gmra.mxu3 %vm408_vm0, %v403_v22  ;;  %v391_v22 = vpack.c.bf16 %v2106_v52, %v2105_v46 }
  0xf5   :  { %v3261_v61 = vpop.permute.xlu1 %2281 }
  0xfa   :  { %2147 = vmatmul.msk.bf16.gmra.mxu1 %vm408_vm0, %v396_v38 }
  0xfd   :  { %v3270_v31 = vpop.permute.xlu1 %2296 }
  0xff   :  { %v3273_v32 = vpop.f32.mrf.mxu0 }
 0x102   :  { %2139 = vmatmul.msk.bf16.gmra.mxu0 %vm408_vm0, %v388_v18 }
 0x105   :  { %v3276_v25 = vpop.permute.xlu1 %2311 }
 0x107   :  { %v3278_v0 = vpop.f32.mrf.mxu0 }
 0x10d   :  { %v3285_v59 = vpop.permute.xlu1 %2326 }
 0x10f   :  { %v3288_v17 = vpop.f32.mrf.mxu0 }
 0x112   :  { %2140 = vmatmul.msk.bf16.gmra.mxu0 %vm408_vm0, %v389_v36 }
 0x115   :  { %v2342_v23 = vpop.permute.xlu1 %2341  ;;  %v575_v30 = vpop.f32.mrf.mxu3 }
 0x116   :  { %v2344_v37 = vunpack.i.h.bf16 %v2342_v23  ;;  %v2343_v38 = vunpack.i.l.bf16 %v2342_v23 }
 0x117   :  { %v3291_v44 = vpop.f32.mrf.mxu0 }
 0x11d   :  { %v2357_v12 = vpop.permute.xlu1 %2356  ;;  %v577_v43 = vpop.f32.mrf.mxu3 }
 0x11e   :  { %v2359_v40 = vunpack.i.h.bf16 %v2357_v12  ;;  %v2358_v19 = vunpack.i.l.bf16 %v2357_v12 }
 0x11f   :  { %v3299_v13 = vpop.f32.mrf.mxu0 }
 0x122   :  { %2141 = vmatmul.msk.bf16.gmra.mxu0 %vm408_vm0, %v390_v29 }
 0x125   :  { %v2372_v56 = vpop.permute.xlu1 %2371  ;;  %v580_v39 = vpop.f32.mrf.mxu3 }
 0x126   :  { %v2374_v24 = vunpack.i.h.bf16 %v2372_v56  ;;  %v2373_v28 = vunpack.i.l.bf16 %v2372_v56  ;;  %v3317_v58 = vsel %vm1009_vm4, %v580_v39, %v2358_v19  ;;  %v2302_v56 = vpop.permute.xlu2 %2301 }
 0x127   :  { %v3302_v21 = vpop.f32.mrf.mxu0  ;;  %v2304_v42 = vunpack.i.h.bf16 %v2302_v56 }
 0x128   :  { %v3305_v45 = vsel %vm1009_vm4, %v575_v30, %v2373_v28  ;;  %v3308_v35 = vsel %vm1009_vm4, %v577_v43, %v2374_v24  ;;  %v2277_v30 = vpop.permute.xlu0 %2276 }
 0x129   :  { %v2279_v53 = vunpack.i.h.bf16 %v2277_v30  ;;  %v2278_v36 = vunpack.i.l.bf16 %v2277_v30  ;;  %v2303_v30 = vunpack.i.l.bf16 %v2302_v56 }
 0x12d   :  { %v582_v27 = vpop.f32.mrf.mxu3 }
 0x12e   :  { %v3320_v10 = vsel %vm1009_vm4, %v582_v27, %v2359_v40  ;;  %v2317_v52 = vpop.permute.xlu2 %2316 }
 0x12f   :  { %v3323_v60 = vpop.f32.mrf.mxu0 }
 0x130   :  { %v2292_v9 = vpop.permute.xlu0 %2291 }
 0x131   :  { %v2294_v6 = vunpack.i.h.bf16 %v2292_v9  ;;  %v2293_v16 = vunpack.i.l.bf16 %v2292_v9 }
 0x132   :  { %2142 = vmatmul.msk.bf16.gmra.mxu0 %vm408_vm0, %v391_v22 }
 0x135   :  { %v585_v63 = vpop.f32.mrf.mxu3 }
 0x136   :  { %v3333_v47 = vsel %vm1009_vm4, %v585_v63, %v2343_v38 }
 0x137   :  { %v3328_v55 = vpop.f32.mrf.mxu0  ;;  %v3330_v34 = vpop.f32.mrf.mxu1 }
 0x138   :  { %v2307_v28 = vpop.permute.xlu0 %2306 }
 0x139   :  { %v2309_v7 = vunpack.i.h.bf16 %v2307_v28 }
 0x13d   :  { %v587_v51 = vpop.f32.mrf.mxu3 }
 0x13e   :  { %v3336_v18 = vsel %vm1009_vm4, %v587_v51, %v2344_v37  ;;  %v3362_v37 = vpop.permute.xlu2 %2331 }
 0x13f   :  { %v3338_v5 = vpop.f32.mrf.mxu0  ;;  %v3340_v48 = vpop.f32.mrf.mxu1  ;;  %3963 = vst [vmem:[#allocation18_spill] sm:$0xff] %v3362_v37  ;;  %v2319_v37 = vunpack.i.h.bf16 %v2317_v52 }
 0x140   :  { %v3358_v46 = vpop.permute.xlu0 %2321 }
 0x141   :  { %v2324_v9 = vunpack.i.h.bf16 %v3358_v46 }
 0x145   :  { %v3344_v12 = vpop.f32.mrf.mxu3 }
 0x146   :  { %v3370_v1 = vpop.permute.xlu2 %2346 }
 0x147   :  { %v3346_v43 = vpop.f32.mrf.mxu0  ;;  %v555_v23 = vpop.f32.mrf.mxu1  ;;  %3964 = vst [vmem:[#allocation19_spill] sm:$0xff] %v3370_v1 }
 0x148   :  { %v3368_v33 = vpop.permute.xlu0 %2336 }
 0x14d   :  { %v3348_v29 = vpop.f32.mrf.mxu3 }
 0x14f   :  { %v3350_v39 = vpop.f32.mrf.mxu0  ;;  %v557_v24 = vpop.f32.mrf.mxu1 }
 0x150   :  { %v3377_v54 = vpop.permute.xlu0 %2351 }
 0x155   :  { %v3352_v26 = vpop.f32.mrf.mxu3 }
 0x157   :  { %v3354_v40 = vpop.f32.mrf.mxu0  ;;  %v560_v19 = vpop.f32.mrf.mxu1 }
 0x158   :  { %v1038_v3 = vsel %vm1009_vm4, %v560_v19, %v2288_v14 }
 0x15d   :  { %v3356_v27 = vpop.f32.mrf.mxu3 }
 0x15f   :  { %v3360_v22 = vpop.f32.mrf.mxu0  ;;  %v562_v63 = vpop.f32.mrf.mxu1 }
 0x160   :  { %v1039_v11 = vsel %vm1009_vm4, %v562_v63, %v2289_v8  ;;  %v2339_v63 = vunpack.i.h.bf16 %v3368_v33 }
 0x161   :  { %v1072_v1 = vpack.c.bf16 %v1039_v11, %v1038_v3  ;;  %v2284_v11 = vunpack.i.h.bf16 %v3261_v61 }
 0x165   :  { %v3364_v38 = vpop.f32.mrf.mxu3 }
 0x167   :  { %v3366_v51 = vpop.f32.mrf.mxu0  ;;  %v565_v57 = vpop.f32.mrf.mxu1 }
 0x168   :  { %v1040_v20 = vsel %vm1009_vm4, %v565_v57, %v2278_v36  ;;  %v1037_v57 = vsel %vm1009_vm4, %v557_v24, %v2304_v42  ;;  %v2318_v36 = vunpack.i.l.bf16 %v2317_v52  ;;  %v2283_v42 = vunpack.i.l.bf16 %v3261_v61 }
 0x169   :  { %v2298_v24 = vunpack.i.l.bf16 %v3270_v31 }
 0x16a   :  { %v1034_v56 = vsel %vm1009_vm4, %v3330_v34, %v2318_v36 }
 0x16d   :  { %v602_v4 = vpop.f32.mrf.mxu3 }
 0x16f   :  { %v3372_v15 = vpop.f32.mrf.mxu0  ;;  %v567_v49 = vpop.f32.mrf.mxu1 }
 0x170   :  { %v1041_v62 = vsel %vm1009_vm4, %v567_v49, %v2279_v53  ;;  %v3381_v49 = vpop.permute.xlu2 %2361  ;;  %v1024_v8 = vsel %vm1009_vm4, %v3372_v15, %v2293_v16  ;;  %v2299_v16 = vunpack.i.h.bf16 %v3270_v31  ;;  %v2314_v31 = vunpack.i.h.bf16 %v3276_v25 }
 0x171   :  { %v1073_v50 = vpack.c.bf16 %v1041_v62, %v1040_v20  ;;  %v2308_v62 = vunpack.i.l.bf16 %v2307_v28  ;;  %v2367_v28 = vpop.permute.xlu0 %2366 }
 0x172   :  { %v1055_v36 = vsel %vm1009_vm4, %v602_v4, %v2299_v16  ;;  %v2329_v4 = vunpack.i.h.bf16 %v3285_v59 }
 0x173   :  { %1100 = vmatpush.bf16.msra.mxu2 %v1073_v50  ;;  %v1036_v50 = vsel %vm1009_vm4, %v555_v23, %v2303_v30  ;;  %v1023_v23 = vsel %vm1009_vm4, %v3366_v51, %v2309_v7  ;;  %v1022_v61 = vsel %vm1009_vm4, %v3360_v22, %v2308_v62 }
 0x174   :  { %v1071_v53 = vpack.c.bf16 %v1037_v57, %v1036_v50  ;;  %v2338_v57 = vunpack.i.l.bf16 %v3368_v33 }
 0x175   :  { %v605_v2 = vpop.f32.mrf.mxu3 }
 0x177   :  { %v3383_v20 = vpop.f32.mrf.mxu0  ;;  %1101 = vmatpush.bf16.msra.mxu2 %v1072_v1  ;;  %v1035_v1 = vsel %vm1009_vm4, %v3340_v48, %v2319_v37  ;;  %v1064_v48 = vpack.c.bf16 %v1023_v23, %v1022_v61  ;;  %v1056_v37 = vsel %vm1009_vm4, %v605_v2, %v2283_v42  ;;  %v1053_v42 = vsel %vm1009_vm4, %v3356_v27, %v2314_v31 }
 0x178   :  { %v1025_v14 = vsel %vm1009_vm4, %v3383_v20, %v2294_v6  ;;  %v2323_v6 = vunpack.i.l.bf16 %v3358_v46  ;;  %v1070_v52 = vpack.c.bf16 %v1035_v1, %v1034_v56  ;;  %v1021_v46 = vsel %vm1009_vm4, %v3354_v40, %v2324_v9  ;;  %v3416_v2 = vpop.permute.xlu2 %2376 }
 0x179   :  { %v1065_v3 = vpack.c.bf16 %v1025_v14, %v1024_v8  ;;  %v2313_v8 = vunpack.i.l.bf16 %v3276_v25  ;;  %v2354_v14 = vunpack.i.h.bf16 %v3377_v54  ;;  %v1018_v25 = vsel %vm1009_vm4, %v3338_v5, %v2338_v57  ;;  %v2382_v56 = vpop.permute.xlu0 %2381 }
 0x17a   :  { %v1020_v62 = vsel %vm1009_vm4, %v3350_v39, %v2323_v6  ;;  %v2368_v9 = vunpack.i.l.bf16 %v2367_v28  ;;  %v2369_v23 = vunpack.i.h.bf16 %v2367_v28  ;;  %v1051_v61 = vsel %vm1009_vm4, %v3348_v29, %v2329_v4 }
 0x17b   :  { %1082 = vmatpush.bf16.msrb.mxu1 %v1065_v3  ;;  %1102 = vmatpush.bf16.msra.mxu2 %v1071_v53  ;;  %v1063_v50 = vpack.c.bf16 %v1021_v46, %v1020_v62  ;;  %v1019_v3 = vsel %vm1009_vm4, %v3346_v43, %v2339_v63  ;;  %v2353_v53 = vunpack.i.l.bf16 %v3377_v54  ;;  %v1052_v16 = vsel %vm1009_vm4, %v3352_v26, %v2313_v8 }
 0x17c   :  { %v1062_v1 = vpack.c.bf16 %v1019_v3, %v1018_v25  ;;  %v1017_v6 = vsel %vm1009_vm4, %v3328_v55, %v2354_v14  ;;  %v1079_v27 = vpack.c.bf16 %v1053_v42, %v1052_v16  ;;  %v1014_v28 = vsel %vm1009_vm4, %v3299_v13, %v2368_v9  ;;  %v2387_v14 = vpop.permute.xlu1 %2386 }
 0x17d   :  { %v607_v19 = vpop.f32.mrf.mxu3  ;;  %v2384_v26 = vunpack.i.h.bf16 %v2382_v56  ;;  %v3968_v9 = vlaneseq }
 0x17e   :  { %v1057_v30 = vsel %vm1009_vm4, %v607_v19, %v2284_v11  ;;  %v1054_v11 = vsel %vm1009_vm4, %v3364_v38, %v2298_v24  ;;  %v2328_v38 = vunpack.i.l.bf16 %v3285_v59  ;;  %v1016_v24 = vsel %vm1009_vm4, %v3323_v60, %v2353_v53 }
 0x17f   :  { %v3409_v7 = vpop.f32.mrf.mxu0  ;;  %1083 = vmatpush.bf16.msrb.mxu1 %v1064_v48  ;;  %1103 = vmatpush.bf16.msra.mxu2 %v1070_v52  ;;  %v1081_v34 = vpack.c.bf16 %v1057_v30, %v1056_v37  ;;  %v1080_v33 = vpack.c.bf16 %v1055_v36, %v1054_v11  ;;  %v1061_v59 = vpack.c.bf16 %v1017_v6, %v1016_v24  ;;  %v2383_v19 = vunpack.i.l.bf16 %v2382_v56  ;;  %v570_v37 = vpop.f32.mrf.mxu1 }
 0x180   :  { %v1050_v48 = vsel %vm1009_vm4, %v3344_v12, %v2328_v38  ;;  %v1015_v52 = vsel %vm1009_vm4, %v3302_v21, %v2369_v23  ;;  %v2392_v63 = vpop.permute.xlu2 %2391  ;;  %v1013_v57 = vsel %vm1009_vm4, %v3291_v44, %v2384_v26  ;;  %v3965_v12 = vpack.c.bf16 %v3336_v18, %v3333_v47 }
 0x181   :  { %1118 = vmatpush.bf16.msrb.mxu3 %v1081_v34  ;;  %v1078_v29 = vpack.c.bf16 %v1051_v61, %v1050_v48  ;;  %v1060_v30 = vpack.c.bf16 %v1015_v52, %v1014_v28  ;;  %v2394_v46 = vunpack.i.h.bf16 %v2392_v63  ;;  %v2393_v34 = vunpack.i.l.bf16 %v2392_v63  ;;  %v84_v61 = vld [vmem:[%s3920_s3] sm:$0xff] }
 0x182   :  { %v1012_v31 = vsel %vm1009_vm4, %v3288_v17, %v2383_v19  ;;  %v2389_v11 = vunpack.i.h.bf16 %v2387_v14  ;;  %v2388_v53 = vunpack.i.l.bf16 %v2387_v14  ;;  %v3967_v18 = vpack.c.bf16 %v3308_v35, %v3305_v45  ;;  %v3972_v19 = vld [vmem:[#allocation19_spill] sm:$0xff] }
 0x183   :  { %1084 = vmatpush.bf16.msrb.mxu1 %v1063_v50  ;;  %v1059_v62 = vpack.c.bf16 %v1013_v57, %v1012_v31  ;;  %v1010_v50 = vsel %vm1009_vm4, %v3273_v32, %v2393_v34  ;;  %v1011_v8 = vsel %vm1009_vm4, %v3278_v0, %v2394_v46  ;;  %v3477_v45 = vadd.s32 256, %v2866_v41 }
 0x184   :  { %v1058_v4 = vpack.c.bf16 %v1011_v8, %v1010_v50  ;;  %v1042_v25 = vsel %vm1009_vm4, %v570_v37, %v2388_v53  ;;  %v2508_v35 = vmov 1.0|1.0   ;;  %v2349_v48 = vunpack.i.h.bf16 %v3972_v19 }
 0x185   :  { %1119 = vmatpush.bf16.msrb.mxu3 %v1080_v33  ;;  %v3966_v33 = vpack.c.bf16 %v3320_v10, %v3317_v58  ;;  %v2348_v63 = vunpack.i.l.bf16 %v3972_v19  ;;  %v2364_v46 = vunpack.i.h.bf16 %v3381_v49  ;;  %v2363_v31 = vunpack.i.l.bf16 %v3381_v49 }
 0x186   :  { %v2379_v50 = vunpack.i.h.bf16 %v3416_v2  ;;  %v2378_v14 = vunpack.i.l.bf16 %v3416_v2  ;;  %v2509_v2 = vmov 32  }
 0x187   :  { %v3435_v54 = vpop.f32.mrf.mxu0  ;;  %1085 = vmatpush.bf16.msrb.mxu1 %v1062_v1  ;;  %v572_v3 = vpop.f32.mrf.mxu1  ;;  %v3469_v1 = vshrl.u32 %v3968_v9, 7  ;;  %2395 = vset.pattern.permute.xlu0 %v2509_v2 }
 0x188   :  { %v1043_v47 = vsel %vm1009_vm4, %v572_v3, %v2389_v11  ;;  %v1027_v49 = vsel %vm1009_vm4, %v3435_v54, %v2379_v50 }
 0x189   :  { %1120 = vmatpush.bf16.msrb.mxu3 %v1079_v27  ;;  %v1074_v38 = vpack.c.bf16 %v1043_v47, %v1042_v25  ;;  %v3472_v23 = vadd.s32 8, %v3469_v1  ;;  %v760_v58 = vmul.u32 16, %v3469_v1  ;;  %v3973_v25 = vmov 0  }
 0x18b   :  { %1086 = vmatpush.bf16.msrb.mxu1 %v1061_v59  ;;  %v761_v10 = vmul.u32 16, %v3472_v23  ;;  %v772_v6 = vadd.s32 16, %v760_v58  ;;  %vm765_vm0 = vcmp.ge.s32.totalorder %v3477_v45, %v760_v58  ;;  %vm763_vm13 = vcmp.ge.s32.totalorder %v2866_v41, %v760_v58  ;;  %v3971_v59 = vld [vmem:[#allocation18_spill] sm:$0xff] }
 0x18c   :  { %v2334_v28 = vunpack.i.h.bf16 %v3971_v59  ;;  %v2333_v26 = vunpack.i.l.bf16 %v3971_v59 }
 0x18d   :  { %1121 = vmatpush.bf16.msrb.mxu3 %v1078_v29  ;;  %v773_v56 = vadd.s32 16, %v761_v10  ;;  %vm768_vm7 = vcmp.ge.s32.totalorder %v3477_v45, %v761_v10  ;;  %vm777_vm8 = vcmp.lt.s32.totalorder %v3477_v45, %v772_v6  ;;  %vm766_vm14 = vcmp.ge.s32.totalorder %v2866_v41, %v761_v10 }
 0x18e   :  { %vm786_vm10 = vmand %vm765_vm0, %vm777_vm8  ;;  %vm775_vm15 = vcmp.lt.s32.totalorder %v2866_v41, %v772_v6 }
 0x18f   :  { %v3451_v36 = vpop.f32.mrf.mxu0  ;;  %1087 = vmatpush.bf16.msrb.mxu1 %v1060_v30  ;;  %vm780_vm9 = vcmp.lt.s32.totalorder %v3477_v45, %v773_v56  ;;  %vm778_vm1 = vcmp.lt.s32.totalorder %v2866_v41, %v773_v56  ;;  %vm3488_vm2 = vmand %vm763_vm13, %vm775_vm15 }
 0x190   :  { %vm789_vm11 = vmand %vm768_vm7, %vm780_vm9  ;;  %v1028_v11 = vsel %vm1009_vm4, %v3451_v36, %v2363_v31 }
 0x191   :  { %1122 = vmatpush.bf16.msrb.mxu3 %v3965_v12  ;;  %vm2220_vm12 = vmpackc.low %vm789_vm11, %vm786_vm10  ;;  %v758_v12 = vadd.s32 128, %v2866_v41 }
 0x192   :  { %vm787_vm3 = vmand %vm766_vm14, %vm778_vm1 }
 0x193   :  { %1088 = vmatpush.bf16.msrb.mxu1 %v1059_v62  ;;  %vm2212_vm5 = vmpackc.low %vm787_vm3, %vm3488_vm2  ;;  %vm764_vm6 = vcmp.ge.s32.totalorder %v758_v12, %v760_v58  ;;  %vm776_vm0 = vcmp.lt.s32.totalorder %v758_v12, %v772_v6  ;;  %vm767_vm7 = vcmp.ge.s32.totalorder %v758_v12, %v761_v10  ;;  %vm779_vm8 = vcmp.lt.s32.totalorder %v758_v12, %v773_v56  ;;  %v82_v58 = vld [vmem:[%s3918_s2 + $0x10] sm:$0xff]  ;;  %v83_v10 = vld [vmem:[%s3918_s2 + $0x18] sm:$0xff] }
 0x194   :  { %vm785_vm9 = vmand %vm764_vm6, %vm776_vm0  ;;  %v80_v6 = vld [vmem:[%s3918_s2] sm:$0xff]  ;;  %v81_v56 = vld [vmem:[%s3918_s2 + $0x8] sm:$0xff] }
 0x195   :  { %1123 = vmatpush.bf16.msrb.mxu3 %v3966_v33  ;;  %v1026_v33 = vsel %vm1009_vm4, %v3409_v7, %v2378_v14  ;;  %vm788_vm10 = vmand %vm767_vm7, %vm779_vm8  ;;  %v3519_v7 = vadd.s32 16, %v3469_v1 }
 0x196   :  { %vm2216_vm11 = vmpackc.low %vm788_vm10, %vm785_vm9 }
 0x197   :  { %v537_v42 = vpop.f32.mrf.mxu0  ;;  %1089 = vmatpush.bf16.msrb.mxu1 %v1058_v4  ;;  %v1066_v4 = vpack.c.bf16 %v1027_v49, %v1026_v33  ;;  %v762_v9 = vmul.u32 16, %v3519_v7  ;;  %v3551_v33 = vmul.u32 16, %v2866_v41 }
 0x198   :  { %v1029_v8 = vsel %vm1009_vm4, %v537_v42, %v2364_v46 }
 0x199   :  { %1124 = vmatpush.bf16.msrb.mxu3 %v3967_v18  ;;  %v1067_v3 = vpack.c.bf16 %v1029_v8, %v1028_v11  ;;  %vm770_vm1 = vcmp.ge.s32.totalorder %v758_v12, %v762_v9  ;;  %vm771_vm0 = vcmp.ge.s32.totalorder %v3477_v45, %v762_v9 }
 0x19a   :  { %2213 = vmatmul.msk.bf16.vlgmr.msrb.gmra.mxu1 %vm2212_vm5, %v2508_v35 }
 0x19d   :  { %1125 = vmatpush.bf16.msrb.mxu3 %v1074_v38  ;;  %v774_v38 = vadd.s32 16, %v762_v9 }
 0x19f   :  { %v540_v16 = vpop.f32.mrf.mxu0  ;;  %vm781_vm13 = vcmp.lt.s32.totalorder %v2866_v41, %v774_v38  ;;  %vm782_vm3 = vcmp.lt.s32.totalorder %v758_v12, %v774_v38  ;;  %vm783_vm7 = vcmp.lt.s32.totalorder %v3477_v45, %v774_v38  ;;  %v1200_v45 = vpack.c.bf16 %v81_v56, %v80_v6 }
 0x1a0   :  { %2221 = vmatmul.msk.bf16.vlgmr.msrb.gmra.mxu3 %vm2220_vm12, %v2508_v35  ;;  %v1030_v57 = vsel %vm1009_vm4, %v540_v16, %v2348_v63  ;;  %vm769_vm12 = vcmp.ge.s32.totalorder %v2866_v41, %v762_v9  ;;  %vm791_vm5 = vmand %vm770_vm1, %vm782_vm3  ;;  %v1201_v16 = vpack.c.bf16 %v83_v10, %v82_v58  ;;  %vm1233_vm1 = vcmp.ge.s32.totalorder %v3472_v23, %v3551_v33 }
 0x1a1   :  { %vm790_vm14 = vmand %vm769_vm12, %vm781_vm13  ;;  %v1218_v9 = vadd.s32 24, %v3469_v1  ;;  %v1219_v6 = vadd.s32 32, %v3469_v1  ;;  %v1220_v56 = vadd.s32 40, %v3469_v1 }
 0x1a2   :  { %vm2214_vm15 = vmpackc.low %vm790_vm14, %vm790_vm14  ;;  %1211 = vmatpush.bf16.msra.mxu1 %v1201_v16  ;;  %vm1232_vm14 = vcmp.ge.s32.totalorder %v3469_v1, %v3551_v33 }
 0x1a3   :  { %vm2218_vm6 = vmpackc.low %vm791_vm5, %vm791_vm5 }
 0x1a4   :  { %vm792_vm8 = vmand %vm771_vm0, %vm783_vm7  ;;  %vm1347_vm0 = vcmask 1043456   ;;  %vm1322_vm7 = vcmask 64512  }
 0x1a5   :  { %vm2222_vm9 = vmpackc.low %vm792_vm8, %vm792_vm8  ;;  %vm1234_vm8 = vcmp.ge.s32.totalorder %v3519_v7, %v3551_v33 }
 0x1a6   :  { %1212 = vmatpush.bf16.msra.mxu1 %v1200_v45 }
 0x1a7   :  { %v542_v27 = vpop.f32.mrf.mxu0 }
 0x1a8   :  { %v1031_v34 = vsel %vm1009_vm4, %v542_v27, %v2349_v48 }
 0x1a9   :  { %v1068_v62 = vpack.c.bf16 %v1031_v34, %v1030_v57 }
 0x1aa   :  { %2215 = vmatmul.msk.bf16.gmra.mxu1 %vm2214_vm15, %v2508_v35 }
 0x1af   :  { %v545_v24 = vpop.f32.mrf.mxu0 }
 0x1b0   :  { %v1032_v37 = vsel %vm1009_vm4, %v545_v24, %v2333_v26  ;;  %2223 = vmatmul.msk.bf16.gmra.mxu3 %vm2222_vm9, %v2508_v35 }
 0x1b7   :  { %v547_v52 = vpop.f32.mrf.mxu0 }
 0x1b8   :  { %v1033_v29 = vsel %vm1009_vm4, %v547_v52, %v2334_v28 }
 0x1b9   :  { %v1069_v30 = vpack.c.bf16 %v1033_v29, %v1032_v37 }
 0x1bb   :  { %1104 = vmatpush.bf16.msra.mxu2 %v1069_v30 }
 0x1bf   :  { %1105 = vmatpush.bf16.msra.mxu2 %v1068_v62 }
 0x1c3   :  { %1106 = vmatpush.bf16.msra.mxu2 %v1067_v3 }
 0x1c7   :  { %1107 = vmatpush.bf16.msra.mxu2 %v1066_v4  ;;  %v3554_v4 = vadd.s32 16, %v3551_v33 }
 0x1c9   :  { %vm1249_vm15 = vcmp.lt.s32.totalorder %v3469_v1, %v3554_v4  ;;  %vm1250_vm3 = vcmp.lt.s32.totalorder %v3472_v23, %v3554_v4  ;;  %vm1251_vm9 = vcmp.lt.s32.totalorder %v3519_v7, %v3554_v4 }
 0x1ca   :  { %2217 = vmatmul.msk.bf16.vlgmr.msra.gmra.mxu2 %vm2216_vm11, %v2508_v35  ;;  %vm1265_vm5 = vmand %vm1232_vm14, %vm1249_vm15  ;;  %vm1236_vm14 = vcmp.ge.s32.totalorder %v1219_v6, %v3551_v33  ;;  %vm1253_vm15 = vcmp.lt.s32.totalorder %v1219_v6, %v3554_v4 }
 0x1da   :  { %2219 = vmatmul.msk.bf16.gmra.mxu2 %vm2218_vm6, %v2508_v35  ;;  %vm1266_vm6 = vmand %vm1233_vm1, %vm1250_vm3  ;;  %vm1237_vm1 = vcmp.ge.s32.totalorder %v1220_v56, %v3551_v33  ;;  %vm1254_vm3 = vcmp.lt.s32.totalorder %v1220_v56, %v3554_v4 }
 0x217   :  { %v1091_v36 = vpop.f32.mrf.mxu1 }
 0x21f   :  { %v3542_v34 = vpop.f32.mrf.mxu1 }
 0x223   :  { %v1127_v47 = vpop.f32.mrf.mxu3 }
 0x227   :  { %v1096_v57 = vpop.f32.mrf.mxu1 }
 0x22b   :  { %v3546_v12 = vpop.f32.mrf.mxu3 }
 0x22f   :  { %v1098_v62 = vpop.f32.mrf.mxu1 }
 0x233   :  { %v1132_v14 = vpop.f32.mrf.mxu3 }
 0x23b   :  { %v1134_v49 = vpop.f32.mrf.mxu3 }
 0x24d   :  { %v1109_v53 = vpop.f32.mrf.mxu2 }
 0x24e   :  { %v1110_v42 = vadd.f32 %v1109_v53, %v1091_v36  ;;  %v3974_v53 = vmov 0.0  }
 0x250   :  { %v1128_v18 = vadd.f32 %v1127_v47, %v1110_v42  ;;  %v2225_v42 = vsel %vm1265_vm5, 1.0, %v3974_v53  ;;  %v2226_v47 = vsel %vm1266_vm6, 1.0, %v3974_v53  ;;  %vm1269_vm5 = vmand %vm1236_vm14, %vm1253_vm15 }
 0x251   :  { %vm1270_vm6 = vmand %vm1237_vm1, %vm1254_vm3  ;;  %v2229_v7 = vsel %vm1269_vm5, 1.0, %v3974_v53 }
 0x252   :  { %v1136_v54 = vadd.f32 1e-06, %v1128_v18  ;;  %v2230_v45 = vsel %vm1270_vm6, 1.0, %v3974_v53 }
 0x254   :  { %1141 = vperm.xlu0 %2395, %v1136_v54  }
 0x255   :  { %v3544_v31 = vpop.f32.mrf.mxu2 }
 0x25c   :  { %2411 = vset.pattern.permute.xlu0 %v3973_v25  ;;  %v1313_v25 = vpack.c.bf16 %v2226_v47, %v2225_v42  ;;  %v1229_v42 = vadd.s32 112, %v3469_v1  ;;  %v1230_v47 = vadd.s32 120, %v3469_v1 }
 0x25d   :  { %v1114_v50 = vpop.f32.mrf.mxu2 }
 0x25e   :  { %v1115_v8 = vadd.f32 %v1114_v50, %v1096_v57 }
 0x260   :  { %v3548_v11 = vadd.f32 %v1132_v14, %v1115_v8  ;;  %v1227_v8 = vadd.s32 96, %v3469_v1  ;;  %v1228_v14 = vadd.s32 104, %v3469_v1 }
 0x265   :  { %v1116_v3 = vpop.f32.mrf.mxu2 }
 0x2c6   :  { %v1142_v27 = vpop.permute.xlu0 %1141 }
 0x2c7   :  { %2441 = vrcp.f32 %v1142_v27  ;;  %v1165_v26 = vand.u32 2147483648, %v1142_v27  ;;  %v1163_v48 = vand.u32 2147483647, %v1142_v27  ;;  %vm1159_vm11 = vweird.f32 %v1142_v27 }
 0x2c9   :  { %v1166_v63 = vor.u32 1.1754944e-38, %v1165_v26  ;;  %vm1164_vm13 = vcmp.eq.f32.partialorder %v1163_v48, 8.507059e+37  ;;  %v1223_v48 = vadd.s32 64, %v3469_v1 }
 0x2cb   :  { %vm1240_vm14 = vcmp.ge.s32.totalorder %v1223_v48, %v3551_v33  ;;  %vm1257_vm15 = vcmp.lt.s32.totalorder %v1223_v48, %v3554_v4 }
 0x2cc   :  { %vm1273_vm5 = vmand %vm1240_vm14, %vm1257_vm15  ;;  %vm1244_vm14 = vcmp.ge.s32.totalorder %v1227_v8, %v3551_v33  ;;  %vm1261_vm15 = vcmp.lt.s32.totalorder %v1227_v8, %v3554_v4 }
 0x2cd   :  { %v2442_v24 = vpop.eup %2441 }
 0x2ce   :  { %v1155_v59 = vmul.f32 %v2442_v24, %v1142_v27  ;;  %vm1160_vm10 = vweird.f32 %v2442_v24  ;;  %v1315_v27 = vpack.c.bf16 %v2230_v45, %v2229_v7 }
 0x2cf   :  { %vm1161_vm12 = vmor %vm1159_vm11, %vm1160_vm10  ;;  %vm1235_vm10 = vcmp.ge.s32.totalorder %v1218_v9, %v3551_v33  ;;  %vm1252_vm11 = vcmp.lt.s32.totalorder %v1218_v9, %v3554_v4 }
 0x2d0   :  { %v1156_v28 = vsub.f32 1.0, %v1155_v59  ;;  %v1222_v59 = vadd.s32 56, %v3469_v1 }
 0x2d2   :  { %v1157_v19 = vmul.f32 %v2442_v24, %v1156_v28 }
 0x2d4   :  { %v1158_v52 = vadd.f32 %v2442_v24, %v1157_v19 }
 0x2d6   :  { %v1162_v37 = vsel %vm1161_vm12, %v2442_v24, %v1158_v52  ;;  %vm1267_vm12 = vmand %vm1234_vm8, %vm1251_vm9  ;;  %v1221_v24 = vadd.s32 48, %v3469_v1  ;;  %v1224_v52 = vadd.s32 72, %v3469_v1 }
 0x2d7   :  { %v1167_v29 = vsel %vm1164_vm13, %v1166_v63, %v1162_v37  ;;  %vm1268_vm13 = vmand %vm1235_vm10, %vm1252_vm11  ;;  %v2227_v58 = vsel %vm1267_vm12, 1.0, %v3974_v53  ;;  %vm1239_vm10 = vcmp.ge.s32.totalorder %v1222_v59, %v3551_v33  ;;  %vm1256_vm11 = vcmp.lt.s32.totalorder %v1222_v59, %v3554_v4 }
 0x2d8   :  { %v1168_v30 = vmul.f32 %v1167_v29, %v1128_v18  ;;  %v2228_v10 = vsel %vm1268_vm13, 1.0, %v3974_v53  ;;  %vm1238_vm8 = vcmp.ge.s32.totalorder %v1221_v24, %v3551_v33  ;;  %vm1255_vm9 = vcmp.lt.s32.totalorder %v1221_v24, %v3554_v4  ;;  %vm1272_vm13 = vmand %vm1239_vm10, %vm1256_vm11 }
 0x2d9   :  { %v1314_v16 = vpack.c.bf16 %v2228_v10, %v2227_v58  ;;  %vm1271_vm12 = vmand %vm1238_vm8, %vm1255_vm9  ;;  %v2232_v26 = vsel %vm1272_vm13, 1.0, %v3974_v53  ;;  %vm1241_vm1 = vcmp.ge.s32.totalorder %v1224_v52, %v3551_v33  ;;  %vm1258_vm3 = vcmp.lt.s32.totalorder %v1224_v52, %v3554_v4 }
 0x2da   :  { %v1199_v46 = vpack.c.bf16 %v1168_v30, %v1168_v30  ;;  %v2231_v28 = vsel %vm1271_vm12, 1.0, %v3974_v53  ;;  %vm1274_vm6 = vmand %vm1241_vm1, %vm1258_vm3  ;;  %v2233_v63 = vsel %vm1273_vm5, 1.0, %v3974_v53  ;;  %v1225_v30 = vadd.s32 80, %v3469_v1 }
 0x2db   :  { %v1316_v19 = vpack.c.bf16 %v2232_v26, %v2231_v28  ;;  %v2234_v37 = vsel %vm1274_vm6, 1.0, %v3974_v53  ;;  %vm1245_vm1 = vcmp.ge.s32.totalorder %v1228_v14, %v3551_v33  ;;  %vm1262_vm3 = vcmp.lt.s32.totalorder %v1228_v14, %v3554_v4  ;;  %vm1277_vm5 = vmand %vm1244_vm14, %vm1261_vm15 }
 0x2dc   :  { %2224 = vmatmul.msk.bf16.vlgmr.msra.gmra.mxu1 %vm1009_vm4, %v1199_v46  ;;  %v1317_v29 = vpack.c.bf16 %v2234_v37, %v2233_v63  ;;  %v1226_v46 = vadd.s32 88, %v3469_v1  ;;  %vm1242_vm8 = vcmp.ge.s32.totalorder %v1225_v30, %v3551_v33  ;;  %vm1259_vm9 = vcmp.lt.s32.totalorder %v1225_v30, %v3554_v4  ;;  %vm1278_vm6 = vmand %vm1245_vm1, %vm1262_vm3 }
 0x2dd   :  { %vm1275_vm12 = vmand %vm1242_vm8, %vm1259_vm9  ;;  %v2237_v3 = vsel %vm1277_vm5, 1.0, %v3974_v53  ;;  %v2238_v49 = vsel %vm1278_vm6, 1.0, %v3974_v53  ;;  %vm1246_vm8 = vcmp.ge.s32.totalorder %v1229_v42, %v3551_v33  ;;  %vm1263_vm9 = vcmp.lt.s32.totalorder %v1229_v42, %v3554_v4 }
 0x2de   :  { %vm1243_vm10 = vcmp.ge.s32.totalorder %v1226_v46, %v3551_v33  ;;  %vm1260_vm11 = vcmp.lt.s32.totalorder %v1226_v46, %v3554_v4  ;;  %v2235_v57 = vsel %vm1275_vm12, 1.0, %v3974_v53  ;;  %vm1279_vm12 = vmand %vm1246_vm8, %vm1263_vm9 }
 0x2df   :  { %vm1276_vm13 = vmand %vm1243_vm10, %vm1260_vm11  ;;  %vm1247_vm10 = vcmp.ge.s32.totalorder %v1230_v47, %v3551_v33  ;;  %vm1264_vm11 = vcmp.lt.s32.totalorder %v1230_v47, %v3554_v4 }
 0x2e0   :  { %v2236_v62 = vsel %vm1276_vm13, 1.0, %v3974_v53  ;;  %vm1280_vm13 = vmand %vm1247_vm10, %vm1264_vm11 }
 0x2e1   :  { %v1318_v50 = vpack.c.bf16 %v2236_v62, %v2235_v57 }
 0x359   :  { %v1214_v36 = vpop.f32.mrf.mxu1 }
 0x35a   :  { %v1321_v18 = vpack.c.bf16 %v1214_v36, %v1214_v36  ;;  %v1319_v36 = vpack.c.bf16 %v2238_v49, %v2237_v3 }
 0x35c   :  { %v1349_v54 = vsel %vm1347_vm0, %v1321_v18, 0  ;;  %v2239_v18 = vsel %vm1279_vm12, 1.0, %v3974_v53 }
 0x35d   :  { %1358 = vmatpush.bf16.msrb.mxu2 %v1349_v54  ;;  %v2240_v54 = vsel %vm1280_vm13, 1.0, %v3974_v53 }
 0x360   :  { %2241 = vmatmul.msk.bf16.vlgmr.msrb.gmra.mxu2 %vm1322_vm7, %v1313_v25  ;;  %v1320_v25 = vpack.c.bf16 %v2240_v54, %v2239_v18 }
 0x361   :  { %v1216_v38 = vpop.f32.mrf.mxu1 }
 0x370   :  { %2242 = vmatmul.msk.bf16.gmra.mxu2 %vm1322_vm7, %v1314_v16 }
 0x380   :  { %2243 = vmatmul.msk.bf16.gmra.mxu2 %vm1322_vm7, %v1315_v27 }
 0x390   :  { %2244 = vmatmul.msk.bf16.gmra.mxu2 %vm1322_vm7, %v1316_v19 }
 0x3a0   :  { %2245 = vmatmul.msk.bf16.gmra.mxu2 %vm1322_vm7, %v1317_v29 }
 0x3b0   :  { %2246 = vmatmul.msk.bf16.gmra.mxu2 %vm1322_vm7, %v1318_v50 }
 0x3c0   :  { %2247 = vmatmul.msk.bf16.gmra.mxu2 %vm1322_vm7, %v1319_v36 }
 0x3d0   :  { %2248 = vmatmul.msk.bf16.gmra.mxu2 %vm1322_vm7, %v1320_v25 }
 0x3e3   :  { %v1360_v9 = vpop.f32.mrf.mxu2 }
 0x3e4   :  { %v1400_v38 = vmul.f32 %v1360_v9, %v3273_v32 }
 0x3e6   :  { %v1416_v58 = vsel %vm1009_vm4, %v1400_v38, 0.0 }
 0x3e7   :  { %1417 = vadd.xlane.f32.xlu0 %v1416_v58 }
 0x3eb   :  { %v1362_v10 = vpop.f32.mrf.mxu2 }
 0x3ec   :  { %v1401_v33 = vmul.f32 %v1362_v10, %v3278_v0 }
 0x3ee   :  { %v1419_v4 = vsel %vm1009_vm4, %v1401_v33, 0.0 }
 0x3ef   :  { %1420 = vadd.xlane.f32.xlu1 %v1419_v4 }
 0x3f3   :  { %v1365_v16 = vpop.f32.mrf.mxu2 }
 0x3f4   :  { %v1402_v6 = vmul.f32 %v1365_v16, %v3288_v17 }
 0x3f6   :  { %v1422_v56 = vsel %vm1009_vm4, %v1402_v6, 0.0 }
 0x3f7   :  { %1423 = vadd.xlane.f32.xlu1 %v1422_v56 }
 0x3fb   :  { %v1367_v7 = vpop.f32.mrf.mxu2 }
 0x3fc   :  { %v1403_v45 = vmul.f32 %v1367_v7, %v3291_v44 }
 0x3fe   :  { %v1425_v27 = vsel %vm1009_vm4, %v1403_v45, 0.0 }
 0x3ff   :  { %1426 = vadd.xlane.f32.xlu2 %v1425_v27 }
 0x403   :  { %v1370_v24 = vpop.f32.mrf.mxu2 }
 0x404   :  { %v1404_v59 = vmul.f32 %v1370_v24, %v3299_v13 }
 0x406   :  { %v1428_v28 = vsel %vm1009_vm4, %v1404_v59, 0.0 }
 0x407   :  { %1429 = vadd.xlane.f32.xlu2 %v1428_v28 }
 0x40b   :  { %v1372_v26 = vpop.f32.mrf.mxu2 }
 0x40c   :  { %v1405_v19 = vmul.f32 %v1372_v26, %v3302_v21 }
 0x40e   :  { %v1431_v48 = vsel %vm1009_vm4, %v1405_v19, 0.0 }
 0x40f   :  { %1432 = vadd.xlane.f32.xlu0 %v1431_v48 }
 0x413   :  { %v1375_v52 = vpop.f32.mrf.mxu2 }
 0x414   :  { %v1406_v63 = vmul.f32 %v1375_v52, %v3323_v60 }
 0x416   :  { %v1434_v37 = vsel %vm1009_vm4, %v1406_v63, 0.0 }
 0x417   :  { %1435 = vadd.xlane.f32.xlu0 %v1434_v37 }
 0x41b   :  { %v1377_v29 = vpop.f32.mrf.mxu2 }
 0x41c   :  { %v1407_v30 = vmul.f32 %v1377_v29, %v3328_v55  ;;  %v3975_v29 = vld [vmem:[#allocation15_spill] sm:$0xff] }
 0x41e   :  { %v1437_v46 = vsel %vm1009_vm4, %v1407_v30, 0.0 }
 0x41f   :  { %1438 = vadd.xlane.f32.xlu1 %v1437_v46  ;;  %v3976_v46 = vld [vmem:[#allocation14_spill] sm:$0xff] }
 0x423   :  { %v1380_v57 = vpop.f32.mrf.mxu2 }
 0x424   :  { %v1408_v62 = vmul.f32 %v1380_v57, %v3338_v5 }
 0x426   :  { %v1440_v50 = vsel %vm1009_vm4, %v1408_v62, 0.0 }
 0x427   :  { %1441 = vadd.xlane.f32.xlu1 %v1440_v50 }
 0x42b   :  { %v1382_v8 = vpop.f32.mrf.mxu2 }
 0x42c   :  { %v1409_v14 = vmul.f32 %v1382_v8, %v3346_v43 }
 0x42e   :  { %v1443_v3 = vsel %vm1009_vm4, %v1409_v14, 0.0 }
 0x42f   :  { %1444 = vadd.xlane.f32.xlu2 %v1443_v3 }
 0x433   :  { %v1385_v49 = vpop.f32.mrf.mxu2 }
 0x434   :  { %v1410_v36 = vmul.f32 %v1385_v49, %v3350_v39 }
 0x436   :  { %v1446_v42 = vsel %vm1009_vm4, %v1410_v36, 0.0 }
 0x437   :  { %1447 = vadd.xlane.f32.xlu1 %v1446_v42  ;;  %v3977_v42 = vld [vmem:[#allocation17_spill] sm:$0xff] }
 0x43b   :  { %v1387_v47 = vpop.f32.mrf.mxu2 }
 0x43c   :  { %v1411_v18 = vmul.f32 %v1387_v47, %v3354_v40 }
 0x43e   :  { %v1449_v54 = vsel %vm1009_vm4, %v1411_v18, 0.0  ;;  %v3978_v18 = vld [vmem:[#allocation16_spill] sm:$0xff] }
 0x43f   :  { %1450 = vadd.xlane.f32.xlu2 %v1449_v54 }
 0x443   :  { %v1390_v25 = vpop.f32.mrf.mxu2 }
 0x444   :  { %v1412_v9 = vmul.f32 %v1390_v25, %v3360_v22 }
 0x446   :  { %v1452_v38 = vsel %vm1009_vm4, %v1412_v9, 0.0 }
 0x447   :  { %1453 = vadd.xlane.f32.xlu0 %v1452_v38 }
 0x44b   :  { %v1392_v58 = vpop.f32.mrf.mxu2 }
 0x44c   :  { %v1413_v10 = vmul.f32 %v1392_v58, %v3366_v51 }
 0x44e   :  { %v1455_v33 = vsel %vm1009_vm4, %v1413_v10, 0.0 }
 0x44f   :  { %1456 = vadd.xlane.f32.xlu2 %v1455_v33 }
 0x453   :  { %v1395_v4 = vpop.f32.mrf.mxu2 }
 0x454   :  { %v1414_v16 = vmul.f32 %v1395_v4, %v3372_v15 }
 0x456   :  { %v1458_v6 = vsel %vm1009_vm4, %v1414_v16, 0.0 }
 0x457   :  { %1459 = vadd.xlane.f32.xlu1 %v1458_v6 }
 0x45a   :  { %v1418_v56 = vpop.xlane.xlu0 %1417 }
 0x45b   :  { %vm1464_vm14 = vcmp.lt.f32.partialorder %v1418_v56, 80.0  ;;  %v1397_v7 = vpop.f32.mrf.mxu2 }
 0x45c   :  { %v1415_v45 = vmul.f32 %v1397_v7, %v3383_v20  ;;  %v1480_v27 = vsel %vm1464_vm14, %v1418_v56, 0.0  ;;  %v3979_v7 = vld [vmem:[#allocation9_spill] sm:$0xff] }
 0x45d   :  { %v1496_v59 = vmul.f32 1.442695, %v1480_v27 }
 0x45e   :  { %v1461_v24 = vsel %vm1009_vm4, %v1415_v45, 0.0 }
 0x45f   :  { %1462 = vadd.xlane.f32.xlu2 %v1461_v24  ;;  %2443 = vpow2.f32 %v1496_v59 }
 0x462   :  { %v1421_v28 = vpop.xlane.xlu1 %1420 }
 0x463   :  { %vm1465_vm15 = vcmp.lt.f32.partialorder %v1421_v28, 80.0 }
 0x464   :  { %v1481_v26 = vsel %vm1465_vm15, %v1421_v28, 0.0 }
 0x465   :  { %v1498_v19 = vmul.f32 1.442695, %v1481_v26  ;;  %v2444_v52 = vpop.eup %2443 }
 0x466   :  { %v3668_v57 = vmul.f32 %v2444_v52, %v3976_v46 }
 0x467   :  { %2445 = vpow2.f32 %v1498_v19  ;;  %v3980_v19 = vld [vmem:[#allocation8_spill] sm:$0xff] }
 0x46a   :  { %v1424_v48 = vpop.xlane.xlu1 %1423 }
 0x46b   :  { %vm1466_vm1 = vcmp.lt.f32.partialorder %v1424_v48, 80.0 }
 0x46c   :  { %v1482_v37 = vsel %vm1466_vm1, %v1424_v48, 0.0 }
 0x46d   :  { %v2446_v63 = vpop.eup %2445  ;;  %v1500_v50 = vmul.f32 1.442695, %v1482_v37 }
 0x46e   :  { %v3665_v30 = vmul.f32 %v2446_v63, %v3975_v29 }
 0x46f   :  { %2447 = vpow2.f32 %v1500_v50 }
 0x470   :  { %v2432_v62 = vpack.i.bf16 %v3665_v30, %v3668_v57 }
 0x472   :  { %v1427_v8 = vpop.xlane.xlu2 %1426 }
 0x473   :  { %vm1467_vm3 = vcmp.lt.f32.partialorder %v1427_v8, 80.0 }
 0x474   :  { %v1483_v14 = vsel %vm1467_vm3, %v1427_v8, 0.0  ;;  %v3981_v8 = vld [vmem:[#allocation6_spill] sm:$0xff] }
 0x475   :  { %v1502_v3 = vmul.f32 1.442695, %v1483_v14  ;;  %v2448_v49 = vpop.eup %2447 }
 0x476   :  { %v3676_v54 = vmul.f32 %v2448_v49, %v3978_v18  ;;  %v3982_v18 = vld [vmem:[#allocation7_spill] sm:$0xff] }
 0x477   :  { %2449 = vpow2.f32 %v1502_v3 }
 0x47a   :  { %v3680_v38 = vpop.xlane.xlu2 %1429 }
 0x47b   :  { %vm1468_vm3 = vcmp.lt.f32.partialorder %v3680_v38, 80.0 }
 0x47d   :  { %v2450_v36 = vpop.eup %2449 }
 0x47e   :  { %v3673_v47 = vmul.f32 %v2450_v36, %v3977_v42 }
 0x480   :  { %v2427_v25 = vpack.i.bf16 %v3673_v47, %v3676_v54 }
 0x482   :  { %v3683_v27 = vpop.xlane.xlu0 %1432 }
 0x483   :  { %vm1469_vm1 = vcmp.lt.f32.partialorder %v3683_v27, 80.0 }
 0x48a   :  { %v1436_v63 = vpop.xlane.xlu0 %1435 }
 0x48b   :  { %vm1470_vm14 = vcmp.lt.f32.partialorder %v1436_v63, 80.0 }
 0x492   :  { %v1439_v9 = vpop.xlane.xlu1 %1438 }
 0x493   :  { %vm1471_vm13 = vcmp.lt.f32.partialorder %v1439_v9, 80.0 }
 0x49a   :  { %v1442_v58 = vpop.xlane.xlu1 %1441 }
 0x49b   :  { %vm1472_vm5 = vcmp.lt.f32.partialorder %v1442_v58, 80.0 }
 0x49c   :  { %v1488_v10 = vsel %vm1472_vm5, %v1442_v58, 0.0  ;;  %vm2249_vm5 = vmpackc.low %vm3488_vm2, %vm3488_vm2 }
 0x49d   :  { %v1512_v33 = vmul.f32 1.442695, %v1488_v10 }
 0x49f   :  { %2451 = vpow2.f32 %v1512_v33 }
 0x4a2   :  { %v1445_v4 = vpop.xlane.xlu2 %1444 }
 0x4a3   :  { %vm1473_vm6 = vcmp.lt.f32.partialorder %v1445_v4, 80.0 }
 0x4a4   :  { %v1489_v16 = vsel %vm1473_vm6, %v1445_v4, 0.0 }
 0x4a5   :  { %v2452_v6 = vpop.eup %2451  ;;  %v1514_v56 = vmul.f32 1.442695, %v1489_v16 }
 0x4a6   :  { %v1536_v45 = vmul.f32 %v2452_v6, %v3979_v7 }
 0x4a7   :  { %2453 = vpow2.f32 %v1514_v56  ;;  %v3983_v56 = vld [vmem:[#allocation5_spill] sm:$0xff] }
 0x4a8   :  { %1587 = vperm.xlu1 %2273, %v1536_v45  }
 0x4aa   :  { %v1448_v24 = vpop.xlane.xlu1 %1447 }
 0x4ab   :  { %vm1474_vm8 = vcmp.lt.f32.partialorder %v1448_v24, 80.0 }
 0x4ac   :  { %v1490_v59 = vsel %vm1474_vm8, %v1448_v24, 0.0 }
 0x4ad   :  { %v2454_v28 = vpop.eup %2453  ;;  %v1516_v26 = vmul.f32 1.442695, %v1490_v59 }
 0x4ae   :  { %v1537_v48 = vmul.f32 %v2454_v28, %v3980_v19 }
 0x4af   :  { %2455 = vpow2.f32 %v1516_v26  ;;  %v3984_v26 = vld [vmem:[#allocation4_spill] sm:$0xff] }
 0x4b0   :  { %1592 = vperm.xlu2 %2274, %v1537_v48   ;;  %v2396_v52 = vpack.i.bf16 %v1537_v48, %v1536_v45  ;;  %v1487_v48 = vsel %vm1471_vm13, %v1439_v9, 0.0  ;;  %v1485_v9 = vsel %vm1469_vm1, %v3683_v27, 0.0 }
 0x4b2   :  { %v1451_v37 = vpop.xlane.xlu2 %1450  ;;  %2397 = vrot.lane.b32.xlu0 %v2396_v52, %s2507_s0 }
 0x4b3   :  { %vm1475_vm9 = vcmp.lt.f32.partialorder %v1451_v37, 80.0 }
 0x4b4   :  { %v1491_v29 = vsel %vm1475_vm9, %v1451_v37, 0.0  ;;  %v1510_v37 = vmul.f32 1.442695, %v1487_v48 }
 0x4b5   :  { %v2456_v46 = vpop.eup %2455  ;;  %v1518_v50 = vmul.f32 1.442695, %v1491_v29 }
 0x4b6   :  { %v1538_v14 = vmul.f32 %v2456_v46, %v3981_v8  ;;  %v1486_v46 = vsel %vm1470_vm14, %v1436_v63, 0.0  ;;  %v1484_v63 = vsel %vm1468_vm3, %v3680_v38, 0.0  ;;  %v3989_v38 = vld [vmem:[#allocation13_spill] sm:$0xff] }
 0x4b7   :  { %2457 = vpow2.f32 %v1518_v50 }
 0x4b8   :  { %1597 = vperm.xlu1 %2273, %v1538_v14  }
 0x4ba   :  { %v1454_v3 = vpop.xlane.xlu0 %1453 }
 0x4bb   :  { %vm1476_vm10 = vcmp.lt.f32.partialorder %v1454_v3, 80.0 }
 0x4bc   :  { %v1492_v49 = vsel %vm1476_vm10, %v1454_v3, 0.0  ;;  %v1508_v3 = vmul.f32 1.442695, %v1486_v46 }
 0x4bd   :  { %v2458_v36 = vpop.eup %2457  ;;  %v1520_v42 = vmul.f32 1.442695, %v1492_v49  ;;  %v3985_v49 = vld [vmem:[#allocation3_spill] sm:$0xff] }
 0x4be   :  { %v1539_v58 = vmul.f32 %v2458_v36, %v3982_v18 }
 0x4bf   :  { %2459 = vpow2.f32 %v1520_v42  ;;  %v1506_v42 = vmul.f32 1.442695, %v1485_v9 }
 0x4c0   :  { %1602 = vperm.xlu2 %2274, %v1539_v58   ;;  %v2401_v10 = vpack.i.bf16 %v1539_v58, %v1538_v14 }
 0x4c2   :  { %2402 = vrot.lane.b32.xlu0 %v2401_v10, %s2507_s0  ;;  %v1457_v33 = vpop.xlane.xlu2 %1456  ;;  %v3986_v10 = vld [vmem:[#allocation2_spill] sm:$0xff] }
 0x4c3   :  { %vm1477_vm11 = vcmp.lt.f32.partialorder %v1457_v33, 80.0 }
 0x4c4   :  { %v1493_v4 = vsel %vm1477_vm11, %v1457_v33, 0.0 }
 0x4c5   :  { %v2460_v16 = vpop.eup %2459  ;;  %v1522_v6 = vmul.f32 1.442695, %v1493_v4  ;;  %v1504_v4 = vmul.f32 1.442695, %v1484_v63 }
 0x4c6   :  { %v1540_v7 = vmul.f32 %v2460_v16, %v3983_v56  ;;  %v3987_v16 = vld [vmem:[#allocation10_spill] sm:$0xff] }
 0x4c7   :  { %2461 = vpow2.f32 %v1522_v6 }
 0x4c8   :  { %1607 = vperm.xlu2 %2274, %v1540_v7  }
 0x4ca   :  { %v1460_v45 = vpop.xlane.xlu1 %1459 }
 0x4cb   :  { %vm1478_vm12 = vcmp.lt.f32.partialorder %v1460_v45, 80.0 }
 0x4cc   :  { %v1494_v24 = vsel %vm1478_vm12, %v1460_v45, 0.0 }
 0x4cd   :  { %v2462_v59 = vpop.eup %2461  ;;  %v1524_v28 = vmul.f32 1.442695, %v1494_v24 }
 0x4ce   :  { %v1541_v19 = vmul.f32 %v2462_v59, %v3984_v26 }
 0x4cf   :  { %2463 = vpow2.f32 %v1524_v28 }
 0x4d0   :  { %1612 = vperm.xlu1 %2273, %v1541_v19   ;;  %v2406_v52 = vpack.i.bf16 %v1541_v19, %v1540_v7  ;;  %2465 = vpow2.f32 %v1510_v37  ;;  %v3988_v7 = vld [vmem:[#allocation11_spill] sm:$0xff]  ;;  %v3990_v19 = vld [vmem:[#allocation12_spill] sm:$0xff] }
 0x4d2   :  { %2407 = vrot.lane.b32.xlu2 %v2406_v52, %s2507_s0  ;;  %v1463_v29 = vpop.xlane.xlu2 %1462 }
 0x4d3   :  { %vm1479_vm15 = vcmp.lt.f32.partialorder %v1463_v29, 80.0 }
 0x4d4   :  { %v1495_v50 = vsel %vm1479_vm15, %v1463_v29, 0.0 }
 0x4d5   :  { %v2464_v8 = vpop.eup %2463  ;;  %v1526_v14 = vmul.f32 1.442695, %v1495_v50 }
 0x4d6   :  { %v1542_v36 = vmul.f32 %v2464_v8, %v3985_v49  ;;  %v2466_v18 = vpop.eup %2465 }
 0x4d7   :  { %2467 = vpow2.f32 %v1526_v14  ;;  %v1535_v6 = vmul.f32 %v2466_v18, %v3987_v16 }
 0x4d8   :  { %2469 = vpow2.f32 %v1508_v3 }
 0x4d9   :  { %2471 = vpow2.f32 %v1506_v42 }
 0x4da   :  { %1617 = vperm.xlu2 %2274, %v1542_v36   ;;  %2473 = vpow2.f32 %v1504_v4 }
 0x4dd   :  { %v2468_v58 = vpop.eup %2467 }
 0x4de   :  { %v1543_v33 = vmul.f32 %v2468_v58, %v3986_v10  ;;  %v2470_v27 = vpop.eup %2469 }
 0x4df   :  { %v1534_v45 = vmul.f32 %v2470_v27, %v3988_v7  ;;  %v2472_v24 = vpop.eup %2471 }
 0x4e0   :  { %1622 = vperm.xlu0 %2411, %v1543_v33   ;;  %v2412_v56 = vpack.i.bf16 %v1543_v33, %v1542_v36  ;;  %v1533_v28 = vmul.f32 %v2472_v24, %v3989_v38  ;;  %v2474_v26 = vpop.eup %2473 }
 0x4e1   :  { %v2417_v59 = vpack.i.bf16 %v1535_v6, %v1534_v45  ;;  %v1532_v48 = vmul.f32 %v2474_v26, %v3990_v19 }
 0x4e2   :  { %1582 = vperm.xlu2 %2274, %v1535_v6   ;;  %2413 = vrot.lane.b32.xlu1 %v2412_v56, %s2507_s0 }
 0x4e3   :  { %v2422_v52 = vpack.i.bf16 %v1533_v28, %v1532_v48 }
 0x4e8   :  { %2418 = vrot.lane.b32.xlu0 %v2417_v59, %s2507_s0 }
 0x4e9   :  { %2439 = vset.pattern.permute.xlu0 %v2509_v2 }
 0x4ea   :  { %1572 = vperm.xlu2 %2274, %v1533_v28   ;;  %1577 = vperm.xlu1 %2273, %v1534_v45  }
 0x4f0   :  { %2423 = vrot.lane.b32.xlu0 %v2422_v52, %s2507_s0 }
 0x4f2   :  { %1562 = vperm.xlu2 %2274, %v3673_v47   ;;  %1567 = vperm.xlu1 %2273, %v1532_v48  }
 0x4f8   :  { %2428 = vrot.lane.b32.xlu0 %v2427_v25, %s2507_s0 }
 0x4fa   :  { %1552 = vperm.xlu2 %2274, %v3665_v30   ;;  %1557 = vperm.xlu1 %2273, %v3676_v54  }
 0x500   :  { %2433 = vrot.lane.b32.xlu0 %v2432_v62, %s2507_s0 }
 0x502   :  { %1547 = vperm.xlu1 %2273, %v3668_v57   ;;  %2438 = vset.pattern.permute.xlu2 %v2509_v2 }
 0x50a   :  { %2437 = vset.pattern.permute.xlu1 %v2509_v2  ;;  %v1593_v37 = vpop.permute.xlu2 %1592 }
 0x50b   :  { %v1634_v26 = vmul.f32 %v1593_v37, %v3346_v43 }
 0x51a   :  { %v1603_v29 = vpop.permute.xlu2 %1602  ;;  %v1588_v47 = vpop.permute.xlu1 %1587 }
 0x51b   :  { %v1633_v19 = vmul.f32 %v1588_v47, %v3338_v5 }
 0x522   :  { %v1608_v46 = vpop.permute.xlu2 %1607 }
 0x523   :  { %v1637_v4 = vmul.f32 %v1608_v46, %v3360_v22 }
 0x524   :  { %v2398_v50 = vpop.permute.xlu0 %2397 }
 0x525   :  { %v2400_v24 = vunpack.i.h.bf16 %v2398_v50  ;;  %v2399_v59 = vunpack.i.l.bf16 %v2398_v50 }
 0x527   :  { %v1698_v52 = vsel %vm1009_vm4, %v1634_v26, %v2400_v24 }
 0x52a   :  { %v1598_v8 = vpop.permute.xlu1 %1597 }
 0x52c   :  { %v2408_v25 = vpop.permute.xlu2 %2407 }
 0x52d   :  { %v2410_v18 = vunpack.i.h.bf16 %v2408_v25  ;;  %v2409_v63 = vunpack.i.l.bf16 %v2408_v25 }
 0x52f   :  { %v1701_v27 = vsel %vm1009_vm4, %v1637_v4, %v2409_v63 }
 0x534   :  { %v2403_v14 = vpop.permute.xlu0 %2402  ;;  %v1618_v54 = vpop.permute.xlu2 %1617 }
 0x535   :  { %v1639_v30 = vmul.f32 %v1618_v54, %v3372_v15  ;;  %v2405_v16 = vunpack.i.h.bf16 %v2403_v14  ;;  %v2404_v6 = vunpack.i.l.bf16 %v2403_v14 }
 0x53c   :  { %v1583_v62 = vpop.permute.xlu2 %1582 }
 0x53d   :  { %v1632_v14 = vmul.f32 %v1583_v62, %v3328_v55 }
 0x542   :  { %v1613_v3 = vpop.permute.xlu1 %1612 }
 0x543   :  { %v1638_v57 = vmul.f32 %v1613_v3, %v3366_v51  ;;  %v1636_v51 = vmul.f32 %v1603_v29, %v3354_v40 }
 0x544   :  { %v1573_v28 = vpop.permute.xlu2 %1572 }
 0x545   :  { %v1702_v15 = vsel %vm1009_vm4, %v1638_v57, %v2410_v18  ;;  %v1700_v22 = vsel %vm1009_vm4, %v1636_v51, %v2405_v16 }
 0x546   :  { %v1711_v45 = vpack.c.bf16 %v1702_v15, %v1701_v27 }
 0x54c   :  { %v1563_v47 = vpop.permute.xlu2 %1562 }
 0x552   :  { %v1623_v9 = vpop.permute.xlu0 %1622 }
 0x553   :  { %v1640_v36 = vmul.f32 %v1623_v9, %v3383_v20  ;;  %v1635_v20 = vmul.f32 %v1598_v8, %v3350_v39  ;;  %v1697_v39 = vsel %vm1009_vm4, %v1633_v19, %v2399_v59  ;;  %v1630_v9 = vmul.f32 %v1573_v28, %v3302_v21 }
 0x554   :  { %v2414_v49 = vpop.permute.xlu1 %2413  ;;  %v1709_v8 = vpack.c.bf16 %v1698_v52, %v1697_v39 }
 0x555   :  { %v2416_v2 = vunpack.i.h.bf16 %v2414_v49  ;;  %v2415_v42 = vunpack.i.l.bf16 %v2414_v49  ;;  %v1699_v38 = vsel %vm1009_vm4, %v1635_v20, %v2404_v6 }
 0x556   :  { %v1710_v48 = vpack.c.bf16 %v1700_v22, %v1699_v38 }
 0x557   :  { %v1703_v58 = vsel %vm1009_vm4, %v1639_v30, %v2415_v42  ;;  %v1704_v10 = vsel %vm1009_vm4, %v1640_v36, %v2416_v2  ;;  %v1628_v36 = vmul.f32 %v1563_v47, %v3291_v44 }
 0x558   :  { %v1712_v33 = vpack.c.bf16 %v1704_v10, %v1703_v58  ;;  %v1553_v58 = vpop.permute.xlu2 %1552 }
 0x559   :  { %v1626_v16 = vmul.f32 %v1553_v58, %v3278_v0  ;;  %v87_v0 = vld [vmem:[%s3920_s3 + $0x18] sm:$0xff] }
 0x55a   :  { %v2419_v56 = vpop.permute.xlu0 %2418  ;;  %1713 = vmatpush.bf16.msra.mxu3 %v1712_v33 }
 0x55b   :  { %v2421_v46 = vunpack.i.h.bf16 %v2419_v56  ;;  %v2420_v25 = vunpack.i.l.bf16 %v2419_v56 }
 0x55c   :  { %v1578_v7 = vpop.permute.xlu1 %1577 }
 0x55d   :  { %v1631_v40 = vmul.f32 %v1578_v7, %v3323_v60  ;;  %v1696_v60 = vsel %vm1009_vm4, %v1632_v14, %v2421_v46 }
 0x55e   :  { %1714 = vmatpush.bf16.msra.mxu3 %v1711_v45 }
 0x55f   :  { %v1695_v43 = vsel %vm1009_vm4, %v1631_v40, %v2420_v25  ;;  %v2440_v25 = vld [vmem:[%s3919_s4] ss:$0 sm:$0xff] }
 0x560   :  { %v1708_v3 = vpack.c.bf16 %v1696_v60, %v1695_v43 }
 0x562   :  { %v2424_v29 = vpop.permute.xlu0 %2423  ;;  %1715 = vmatpush.bf16.msra.mxu3 %v1710_v48 }
 0x563   :  { %v2426_v5 = vunpack.i.h.bf16 %v2424_v29  ;;  %v2425_v37 = vunpack.i.l.bf16 %v2424_v29 }
 0x564   :  { %v1568_v50 = vpop.permute.xlu1 %1567 }
 0x565   :  { %v1629_v54 = vmul.f32 %v1568_v50, %v3299_v13  ;;  %v1694_v55 = vsel %vm1009_vm4, %v1630_v9, %v2426_v5 }
 0x566   :  { %1716 = vmatpush.bf16.msra.mxu3 %v1709_v8 }
 0x567   :  { %v1693_v30 = vsel %vm1009_vm4, %v1629_v54, %v2425_v37  ;;  %v1112_v37 = vadd.f32 %v3544_v31, %v3542_v34 }
 0x568   :  { %v1707_v13 = vpack.c.bf16 %v1694_v55, %v1693_v30 }
 0x569   :  { %v3784_v60 = vadd.f32 %v3546_v12, %v1112_v37  ;;  %v1138_v12 = vadd.f32 1e-06, %v3548_v11 }
 0x56a   :  { %v2429_v49 = vpop.permute.xlu0 %2428  ;;  %1717 = vmatpush.bf16.msra.mxu3 %v1708_v3 }
 0x56b   :  { %v2431_v57 = vunpack.i.h.bf16 %v2429_v49  ;;  %v2430_v2 = vunpack.i.l.bf16 %v2429_v49  ;;  %v1137_v47 = vadd.f32 1e-06, %v3784_v60 }
 0x56c   :  { %v1558_v62 = vpop.permute.xlu1 %1557 }
 0x56d   :  { %v1627_v42 = vmul.f32 %v1558_v62, %v3288_v17  ;;  %v1692_v63 = vsel %vm1009_vm4, %v1628_v36, %v2431_v57  ;;  %v3790_v57 = vld [vmem:[%s3921_s5] sm:$0xff] }
 0x56e   :  { %1718 = vmatpush.bf16.msra.mxu3 %v1707_v13  ;;  %v2004_v34 = vmul.f32 %v3790_v57, %v3790_v57  ;;  %v1794_v62 = vpack.c.bf16 %v3790_v57, %v3790_v57 }
 0x56f   :  { %v1691_v18 = vsel %vm1009_vm4, %v1627_v42, %v2430_v2 }
 0x570   :  { %v1706_v21 = vpack.c.bf16 %v1692_v63, %v1691_v18  ;;  %v2005_v31 = vsel %vm1009_vm4, %v2004_v34, 0.0  ;;  %v1799_v13 = vsel %vm1347_vm0, %v1794_v62, 0 }
 0x572   :  { %v2434_v10 = vpop.permute.xlu0 %2433  ;;  %1719 = vmatpush.bf16.msra.mxu3 %v1706_v21 }
 0x573   :  { %v2436_v33 = vunpack.i.h.bf16 %v2434_v10  ;;  %v2435_v6 = vunpack.i.l.bf16 %v2434_v10 }
 0x574   :  { %v1548_v4 = vpop.permute.xlu1 %1547 }
 0x575   :  { %v1625_v15 = vmul.f32 %v1548_v4, %v3273_v32  ;;  %v1690_v17 = vsel %vm1009_vm4, %v1626_v16, %v2436_v33  ;;  %v86_v32 = vld [vmem:[%s3920_s3 + $0x10] sm:$0xff] }
 0x576   :  { %v1749_v7 = vpack.c.bf16 %v87_v0, %v86_v32 }
 0x577   :  { %v1689_v44 = vsel %vm1009_vm4, %v1625_v15, %v2435_v6 }
 0x578   :  { %v1705_v56 = vpack.c.bf16 %v1690_v17, %v1689_v44  ;;  %1762 = vmatpush.bf16.msrb.mxu1 %v1749_v7 }
 0x57a   :  { %1720 = vmatpush.bf16.msra.mxu3 %v1705_v56 }
 0x57d   :  { %2250 = vmatmul.msk.bf16.vlgmr.msra.gmra.mxu3 %vm2249_vm5, %v2508_v35  ;;  %v85_v35 = vld [vmem:[%s3920_s3 + $0x8] sm:$0xff] }
 0x57e   :  { %v1748_v45 = vpack.c.bf16 %v85_v35, %v84_v61  ;;  %1808 = vmatpush.bf16.msrb.mxu3 %v1799_v13 }
 0x580   :  { %1763 = vmatpush.bf16.msrb.mxu1 %v1748_v45 }
 0x600   :  { %v1722_v51 = vpop.f32.mrf.mxu3 }
 0x601   :  { %v1726_v20 = vadd.f32 1e-06, %v1722_v51 }
 0x603   :  { %1729 = vperm.xlu1 %2437, %v1726_v20  }
 0x608   :  { %v1724_v27 = vpop.f32.mrf.mxu3 }
 0x675   :  { %v1730_v24 = vpop.permute.xlu1 %1729 }
 0x676   :  { %2475 = vrcp.f32 %v1730_v24  ;;  %v1743_v28 = vand.u32 2147483648, %v1730_v24  ;;  %v1741_v19 = vand.u32 2147483647, %v1730_v24  ;;  %vm1737_vm6 = vweird.f32 %v1730_v24 }
 0x678   :  { %v1744_v40 = vor.u32 1.1754944e-38, %v1743_v28  ;;  %vm1742_vm9 = vcmp.eq.f32.partialorder %v1741_v19, 8.507059e+37 }
 0x67c   :  { %v2476_v59 = vpop.eup %2475 }
 0x67d   :  { %v1733_v38 = vmul.f32 %v2476_v59, %v1730_v24  ;;  %vm1738_vm2 = vweird.f32 %v2476_v59 }
 0x67e   :  { %vm1739_vm8 = vmor %vm1737_vm6, %vm1738_vm2 }
 0x67f   :  { %v1734_v22 = vsub.f32 1.0, %v1733_v38 }
 0x681   :  { %v1735_v26 = vmul.f32 %v2476_v59, %v1734_v22 }
 0x683   :  { %v1736_v48 = vadd.f32 %v2476_v59, %v1735_v26 }
 0x685   :  { %v1740_v39 = vsel %vm1739_vm8, %v2476_v59, %v1736_v48 }
 0x686   :  { %v1745_v52 = vsel %vm1742_vm9, %v1744_v40, %v1740_v39 }
 0x687   :  { %v3769_v29 = vmul.f32 %v1745_v52, %v1722_v51 }
 0x689   :  { %v1747_v46 = vpack.c.bf16 %v3769_v29, %v3769_v29  ;;  %v1846_v54 = vmul.f32 %v3769_v29, %v3769_v29 }
 0x68b   :  { %2251 = vmatmul.msk.bf16.vlgmr.msrb.gmra.mxu1 %vm1009_vm4, %v1747_v46  ;;  %v1847_v5 = vsel %vm1009_vm4, %v1846_v54, 0.0 }
 0x708   :  { %v1765_v50 = vpop.f32.mrf.mxu1 }
 0x709   :  { %v1766_v8 = vadd.f32 %v2440_v25, %v1765_v50 }
 0x70b   :  { %v1769_v14 = vsel %vm1322_vm7, %v1766_v8, -inf }
 0x70c   :  { %1770 = vmax.xlane.f32.xlu2 %v1769_v14 }
 0x710   :  { %v1767_v43 = vpop.f32.mrf.mxu1 }
 0x714   :  { %1848 = vadd.xlane.f32.xlu2 %v1847_v5 }
 0x72c   :  { %1146 = vperm.xlu2 %2438, %v1137_v47  }
 0x77f   :  { %v1771_v3 = vpop.xlane.xlu2 %1770 }
 0x780   :  { %v1772_v9 = vsub.f32 %v1766_v8, %v1771_v3 }
 0x782   :  { %v1773_v30 = vmul.f32 1.442695, %v1772_v9 }
 0x784   :  { %2477 = vpow2.f32 %v1773_v30 }
 0x787   :  { %v1849_v20 = vpop.xlane.xlu2 %1848 }
 0x788   :  { %vm1857_vm14 = vcmp.eq.f32.partialorder %v1849_v20, inf  ;;  %v1860_v48 = vand.u32 2147483648, %v1849_v20  ;;  %vm1859_vm15 = vcmp.eq.f32.partialorder %v1849_v20, 0.0 }
 0x78a   :  { %v2478_v49 = vpop.eup %2477 }
 0x78b   :  { %v1775_v55 = vsel %vm1322_vm7, %v2478_v49, 0.0 }
 0x78c   :  { %1776 = vadd.xlane.f32.xlu0 %v1775_v55 }
 0x78f   :  { %v3813_v14 = vpop.permute.xlu2 %1146 }
 0x790   :  { %vm1174_vm6 = vweird.f32 %v3813_v14 }
 0x794   :  { %2006 = vadd.xlane.f32.xlu0 %v2005_v31 }
 0x7a8   :  { %1151 = vperm.xlu0 %2439, %v1138_v12  }
 0x7ff   :  { %v1777_v36 = vpop.xlane.xlu0 %1776 }
 0x800   :  { %2479 = vrcp.f32 %v1777_v36  ;;  %v1789_v63 = vand.u32 2147483648, %v1777_v36  ;;  %v1787_v58 = vand.u32 2147483647, %v1777_v36  ;;  %vm1783_vm11 = vweird.f32 %v1777_v36 }
 0x801   :  { %2481 = vrsqrt.f32 %v1849_v20 }
 0x802   :  { %v1790_v33 = vor.u32 1.1754944e-38, %v1789_v63  ;;  %vm1788_vm13 = vcmp.eq.f32.partialorder %v1787_v58, 8.507059e+37 }
 0x806   :  { %v2480_v2 = vpop.eup %2479 }
 0x807   :  { %v1779_v42 = vmul.f32 %v2480_v2, %v1777_v36  ;;  %vm1784_vm10 = vweird.f32 %v2480_v2  ;;  %v2482_v27 = vpop.eup %2481  ;;  %v2007_v0 = vpop.xlane.xlu0 %2006 }
 0x808   :  { %vm1785_vm12 = vmor %vm1783_vm11, %vm1784_vm10  ;;  %v1851_v32 = vmul.f32 %v2482_v27, %v1849_v20  ;;  %2483 = vrsqrt.f32 %v2007_v0  ;;  %vm2015_vm1 = vcmp.eq.f32.partialorder %v2007_v0, inf  ;;  %v2018_v54 = vand.u32 2147483648, %v2007_v0 }
 0x809   :  { %v1780_v18 = vsub.f32 1.0, %v1779_v42  ;;  %vm2017_vm3 = vcmp.eq.f32.partialorder %v2007_v0, 0.0 }
 0x80a   :  { %v1852_v7 = vmul.f32 %v2482_v27, %v1851_v32 }
 0x80b   :  { %v1781_v21 = vmul.f32 %v2480_v2, %v1780_v18 }
 0x80c   :  { %v1853_v61 = vmul.f32 0.5, %v1852_v7 }
 0x80d   :  { %v1782_v10 = vadd.f32 %v2480_v2, %v1781_v21 }
 0x80e   :  { %v2484_v35 = vpop.eup %2483  ;;  %v1854_v45 = vsub.f32 1.5, %v1853_v61 }
 0x80f   :  { %v1786_v4 = vsel %vm1785_vm12, %v2480_v2, %v1782_v10  ;;  %v2009_v24 = vmul.f32 %v2484_v35, %v2007_v0 }
 0x810   :  { %v1791_v16 = vsel %vm1788_vm13, %v1790_v33, %v1786_v4  ;;  %v1855_v59 = vmul.f32 %v2482_v27, %v1854_v45 }
 0x811   :  { %v3800_v6 = vmul.f32 %v2478_v49, %v1791_v16  ;;  %v2010_v38 = vmul.f32 %v2484_v35, %v2009_v24 }
 0x812   :  { %v1856_v22 = vmul.f32 %v1855_v59, %v1849_v20 }
 0x813   :  { %v1793_v15 = vpack.c.bf16 %v3800_v6, %v3800_v6  ;;  %v2011_v28 = vmul.f32 0.5, %v2010_v38 }
 0x814   :  { %v1858_v26 = vsel %vm1857_vm14, %v1849_v20, %v1856_v22 }
 0x815   :  { %2252 = vmatmul.msk.bf16.vlgmr.msrb.gmra.mxu3 %vm1322_vm7, %v1793_v15  ;;  %v2012_v19 = vsub.f32 1.5, %v2011_v28  ;;  %v1861_v39 = vsel %vm1859_vm15, %v1860_v48, %v1858_v26  ;;  %v1180_v48 = vand.u32 2147483648, %v3813_v14 }
 0x816   :  { %v3810_v46 = vmax.f32 %v1861_v39, 1e-12 }
 0x817   :  { %v2013_v52 = vmul.f32 %v2484_v35, %v2012_v19 }
 0x818   :  { %vm1868_vm9 = vweird.f32 %v3810_v46  ;;  %v1872_v61 = vand.u32 2147483647, %v3810_v46 }
 0x819   :  { %v2014_v50 = vmul.f32 %v2013_v52, %v2007_v0 }
 0x81a   :  { %v3818_v55 = vpop.permute.xlu0 %1151 }
 0x81b   :  { %v2016_v5 = vsel %vm2015_vm1, %v2007_v0, %v2014_v50 }
 0x81c   :  { %v2019_v47 = vsel %vm2017_vm3, %v2018_v54, %v2016_v5 }
 0x81d   :  { %v2020_v49 = vmax.f32 %v2019_v47, 1e-12 }
 0x81f   :  { %v2032_v20 = vand.u32 2147483648, %v2020_v49  ;;  %vm2026_vm10 = vweird.f32 %v2020_v49  ;;  %v2030_v32 = vand.u32 2147483647, %v2020_v49 }
 0x821   :  { %v2033_v19 = vor.u32 1.1754944e-38, %v2032_v20  ;;  %vm2031_vm1 = vcmp.eq.f32.partialorder %v2030_v32, 8.507059e+37 }
 0x898   :  { %v3805_v44 = vpop.f32.mrf.mxu3 }
 0x899   :  { %v1814_v17 = vmul.f32 %v3805_v44, %v3805_v44 }
 0x89b   :  { %v1815_v56 = vsel %vm1009_vm4, %v1814_v17, 0.0 }
 0x89c   :  { %1816 = vadd.xlane.f32.xlu1 %v1815_v56 }
 0x8a0   :  { %v1812_v51 = vpop.f32.mrf.mxu3 }
 0x8a1   :  { %v1874_v51 = vand.u32 2147483648, %v3810_v46 }
 0x90f   :  { %v1817_v40 = vpop.xlane.xlu1 %1816 }
 0x910   :  { %2485 = vrsqrt.f32 %v1817_v40  ;;  %vm1825_vm5 = vcmp.eq.f32.partialorder %v1817_v40, inf  ;;  %v1828_v62 = vand.u32 2147483648, %v1817_v40  ;;  %vm1827_vm2 = vcmp.eq.f32.partialorder %v1817_v40, 0.0 }
 0x911   :  { %2487 = vrcp.f32 %v3810_v46 }
 0x912   :  { %2489 = vrcp.f32 %v3813_v14 }
 0x913   :  { %2491 = vrcp.f32 %v3818_v55 }
 0x914   :  { %2493 = vrcp.f32 %v2020_v49 }
 0x916   :  { %v2486_v25 = vpop.eup %2485 }
 0x917   :  { %v1819_v8 = vmul.f32 %v2486_v25, %v1817_v40  ;;  %v3816_v9 = vpop.eup %2487 }
 0x918   :  { %v3820_v34 = vpop.eup %2489  ;;  %v1864_v12 = vmul.f32 %v3816_v9, %v3810_v46  ;;  %vm1869_vm8 = vweird.f32 %v3816_v9 }
 0x919   :  { %v1820_v43 = vmul.f32 %v2486_v25, %v1819_v8  ;;  %v1170_v36 = vmul.f32 %v3820_v34, %v3813_v14  ;;  %v3827_v21 = vpop.eup %2491  ;;  %vm1175_vm12 = vweird.f32 %v3820_v34  ;;  %vm3839_vm13 = vmor %vm1868_vm9, %vm1869_vm8 }
 0x91a   :  { %v1865_v18 = vsub.f32 1.0, %v1864_v12  ;;  %v2494_v10 = vpop.eup %2493  ;;  %v1185_v16 = vmul.f32 %v3827_v21, %v3818_v55  ;;  %vm3858_vm3 = vmor %vm1174_vm6, %vm1175_vm12 }
 0x91b   :  { %v1821_v37 = vmul.f32 0.5, %v1820_v43  ;;  %v1171_v63 = vsub.f32 1.0, %v1170_v36  ;;  %v2022_v17 = vmul.f32 %v2494_v10, %v2020_v49  ;;  %vm2027_vm11 = vweird.f32 %v2494_v10 }
 0x91c   :  { %v1866_v58 = vmul.f32 %v3816_v9, %v1865_v18  ;;  %v1186_v45 = vsub.f32 1.0, %v1185_v16  ;;  %vm3849_vm15 = vmor %vm2026_vm10, %vm2027_vm11  ;;  %vm1190_vm10 = vweird.f32 %v3827_v21  ;;  %vm1189_vm11 = vweird.f32 %v3818_v55 }
 0x91d   :  { %v1822_v3 = vsub.f32 1.5, %v1821_v37  ;;  %v1172_v33 = vmul.f32 %v3820_v34, %v1171_v63  ;;  %v2023_v27 = vsub.f32 1.0, %v2022_v17  ;;  %vm1191_vm12 = vmor %vm1189_vm11, %vm1190_vm10 }
 0x91e   :  { %v1867_v15 = vadd.f32 %v3816_v9, %v1866_v58  ;;  %v1187_v5 = vmul.f32 %v3827_v21, %v1186_v45 }
 0x91f   :  { %v1823_v30 = vmul.f32 %v2486_v25, %v1822_v3  ;;  %v1173_v35 = vadd.f32 %v3820_v34, %v1172_v33  ;;  %v2024_v38 = vmul.f32 %v2494_v10, %v2023_v27  ;;  %v1178_v25 = vand.u32 2147483647, %v3813_v14 }
 0x920   :  { %v1871_v59 = vsel %vm3839_vm13, %v3816_v9, %v1867_v15  ;;  %v1181_v3 = vor.u32 1.1754944e-38, %v1180_v48 }
 0x921   :  { %v1824_v31 = vmul.f32 %v1823_v30, %v1817_v40  ;;  %v2025_v39 = vadd.f32 %v2494_v10, %v2024_v38  ;;  %v1177_v54 = vsel %vm3858_vm3, %v3820_v34, %v1173_v35  ;;  %vm1179_vm9 = vcmp.eq.f32.partialorder %v1178_v25, 8.507059e+37 }
 0x922   :  { %v1188_v34 = vadd.f32 %v3827_v21, %v1187_v5 }
 0x923   :  { %v1826_v13 = vsel %vm1825_vm5, %v1817_v40, %v1824_v31  ;;  %v1875_v40 = vor.u32 1.1754944e-38, %v1874_v51  ;;  %v2029_v43 = vsel %vm3849_vm15, %v2494_v10, %v2025_v39  ;;  %v1182_v31 = vsel %vm1179_vm9, %v1181_v3, %v1177_v54 }
 0x924   :  { %v1829_v2 = vsel %vm1827_vm2, %v1828_v62, %v1826_v13  ;;  %vm1873_vm2 = vcmp.eq.f32.partialorder %v1872_v61, 8.507059e+37  ;;  %v2034_v47 = vsel %vm2031_vm1, %v2033_v19, %v2029_v43  ;;  %v1195_v62 = vand.u32 2147483648, %v3818_v55 }
 0x925   :  { %v1830_v42 = vmax.f32 %v1829_v2, 1e-12  ;;  %v1876_v8 = vsel %vm1873_vm2, %v1875_v40, %v1871_v59  ;;  %v2035_v30 = vmul.f32 %v2034_v47, %v3790_v57  ;;  %v1193_v13 = vand.u32 2147483647, %v3818_v55 }
 0x926   :  { %v1877_v49 = vmul.f32 %v1876_v8, %v3769_v29  ;;  %v1192_v29 = vsel %vm1191_vm12, %v3827_v21, %v1188_v34  ;;  %v1196_v36 = vor.u32 1.1754944e-38, %v1195_v62  ;;  %v1946_v21 = vmul.u32 2, %v2866_v41 }
 0x927   :  { %2495 = vrcp.f32 %v1830_v42  ;;  %v1842_v24 = vand.u32 2147483648, %v1830_v42  ;;  %v1840_v28 = vand.u32 2147483647, %v1830_v42  ;;  %vm1836_vm5 = vweird.f32 %v1830_v42  ;;  %2256 = vmatpush.xpose.msk.msra.mxu3 %vm1009_vm4, %v2035_v30 }
 0x928   :  { %vm1194_vm13 = vcmp.eq.f32.partialorder %v1193_v13, 8.507059e+37  ;;  %v1949_v58 = vadd.s32 2, %v1946_v21  ;;  %vm1948_vm1 = vcmp.ge.s32.totalorder %v3472_v23, %v1946_v21 }
 0x929   :  { %v1843_v50 = vor.u32 1.1754944e-38, %v1842_v24  ;;  %vm1841_vm6 = vcmp.eq.f32.partialorder %v1840_v28, 8.507059e+37 }
 0x92a   :  { %2257 = vmatmul.msk.f32.vlgmr.msra.gmra.mxu3 %vm1009_vm4, %v2035_v30  ;;  %vm1950_vm15 = vcmp.lt.s32.totalorder %v3469_v1, %v1949_v58  ;;  %vm1951_vm3 = vcmp.lt.s32.totalorder %v3472_v23, %v1949_v58 }
 0x92b   :  { %vm1953_vm2 = vmand %vm1948_vm1, %vm1951_vm3  ;;  %vm2059_vm1 = vcmp.eq.s32.totalorder %v3469_v1, %v2866_v41 }
 0x92d   :  { %v2496_v4 = vpop.eup %2495 }
 0x92e   :  { %v1832_v56 = vmul.f32 %v2496_v4, %v1830_v42  ;;  %vm1837_vm14 = vweird.f32 %v2496_v4  ;;  %v1197_v42 = vsel %vm1194_vm13, %v1196_v36, %v1192_v29 }
 0x92f   :  { %vm1838_vm8 = vmor %vm1836_vm5, %vm1837_vm14  ;;  %v3888_v55 = vmul.f32 %v1197_v42, %v3548_v11  ;;  %vm1947_vm14 = vcmp.ge.s32.totalorder %v3469_v1, %v1946_v21  ;;  %v2258_v42 = vsel %vm2059_vm1, 1.0, %v3974_v53 }
 0x930   :  { %v1833_v0 = vsub.f32 1.0, %v1832_v56  ;;  %vm1952_vm5 = vmand %vm1947_vm14, %vm1950_vm15 }
 0x931   :  { %v2253_v33 = vsel %vm1952_vm5, 1.0, %v3974_v53  ;;  %vm1985_vm5 = vcmask 269312  }
 0x932   :  { %v1834_v22 = vmul.f32 %v2496_v4, %v1833_v0 }
 0x934   :  { %v1835_v46 = vadd.f32 %v2496_v4, %v1834_v22 }
 0x936   :  { %v1839_v37 = vsel %vm1838_vm8, %v2496_v4, %v1835_v46  ;;  %v2254_v4 = vsel %vm1953_vm2, 1.0, %v3974_v53 }
 0x937   :  { %v1844_v9 = vsel %vm1841_vm6, %v1843_v50, %v1839_v37  ;;  %v1958_v17 = vpack.c.bf16 %v2254_v4, %v2253_v33 }
 0x938   :  { %v1845_v14 = vmul.f32 %v1844_v9, %v3805_v44  ;;  %v3880_v44 = vmul.f32 %v1182_v31, %v3784_v60  ;;  %v1879_v60 = vmul.f32 %v3888_v55, %v3888_v55 }
 0x93a   :  { %v1942_v12 = vmul.f32 %v1877_v49, %v1845_v14  ;;  %v1878_v2 = vmul.f32 %v3880_v44, %v3880_v44  ;;  %v1883_v63 = vsel %vm1009_vm4, %v1879_v60, 0.0 }
 0x93c   :  { %v1943_v57 = vsel %vm1009_vm4, %v1942_v12, 0.0  ;;  %v1880_v18 = vsel %vm1009_vm4, %v1878_v2, 0.0 }
 0x93d   :  { %1944 = vadd.xlane.f32.xlu1 %v1943_v57 }
 0x945   :  { %1881 = vadd.xlane.f32.xlu1 %v1880_v18 }
 0x94d   :  { %1884 = vadd.xlane.f32.xlu1 %v1883_v63 }
 0x9ad   :  { %v2056_v2 = vpop.f32.mrf.mxu3 }
 0x9ae   :  { %v2062_v58 = vsub.f32 %v2056_v2, %v2258_v42 }
 0x9b0   :  { %v1945_v11 = vpop.xlane.xlu1 %1944 }
 0x9b1   :  { %v1959_v10 = vsel %vm1009_vm4, %v1845_v14, %v1945_v11 }
 0x9b2   :  { %v1960_v16 = vpack.c.bf16 %v1959_v10, %v1959_v10  ;;  %v2063_v10 = vmul.f32 %v2062_v58, %v2062_v58 }
 0x9b4   :  { %v1965_v15 = vsel %vm1347_vm0, %v1960_v16, 0  ;;  %v2064_v4 = vsel %vm1322_vm7, %v2063_v10, 0.0 }
 0x9b5   :  { %1974 = vmatpush.bf16.msra.mxu1 %v1965_v15 }
 0x9b8   :  { %2255 = vmatmul.msk.bf16.vlgmr.msra.gmra.mxu1 %vm1322_vm7, %v1958_v17  ;;  %v1882_v56 = vpop.xlane.xlu1 %1881 }
 0x9b9   :  { %2497 = vrsqrt.f32 %v1882_v56  ;;  %vm1893_vm0 = vcmp.eq.f32.partialorder %v1882_v56, inf  ;;  %v1896_v26 = vand.u32 2147483648, %v1882_v56  ;;  %vm1895_vm8 = vcmp.eq.f32.partialorder %v1882_v56, 0.0 }
 0x9bf   :  { %v2498_v23 = vpop.eup %2497 }
 0x9c0   :  { %v1885_v51 = vpop.xlane.xlu1 %1884  ;;  %v1887_v20 = vmul.f32 %v2498_v23, %v1882_v56 }
 0x9c1   :  { %2499 = vrsqrt.f32 %v1885_v51  ;;  %vm1905_vm6 = vcmp.eq.f32.partialorder %v1885_v51, inf  ;;  %v1908_v52 = vand.u32 2147483648, %v1885_v51  ;;  %vm1907_vm9 = vcmp.eq.f32.partialorder %v1885_v51, 0.0 }
 0x9c2   :  { %v1888_v27 = vmul.f32 %v2498_v23, %v1887_v20 }
 0x9c4   :  { %v1889_v0 = vmul.f32 0.5, %v1888_v27 }
 0x9c6   :  { %v1890_v61 = vsub.f32 1.5, %v1889_v0 }
 0x9c7   :  { %v2500_v32 = vpop.eup %2499 }
 0x9c8   :  { %v1899_v7 = vmul.f32 %v2500_v32, %v1885_v51  ;;  %v1891_v45 = vmul.f32 %v2498_v23, %v1890_v61 }
 0x9ca   :  { %v1900_v35 = vmul.f32 %v2500_v32, %v1899_v7  ;;  %v1892_v59 = vmul.f32 %v1891_v45, %v1882_v56 }
 0x9cc   :  { %v1901_v24 = vmul.f32 0.5, %v1900_v35  ;;  %v1894_v22 = vsel %vm1893_vm0, %v1882_v56, %v1892_v59  ;;  %vm2076_vm0 = vcmask 80896  }
 0x9cd   :  { %v1897_v19 = vsel %vm1895_vm8, %v1896_v26, %v1894_v22 }
 0x9ce   :  { %v1902_v38 = vsub.f32 1.5, %v1901_v24  ;;  %v1910_v40 = vmax.f32 %v1897_v19, 1e-12 }
 0x9d0   :  { %v1903_v28 = vmul.f32 %v2500_v32, %v1902_v38  ;;  %2501 = vrcp.f32 %v1910_v40  ;;  %v1923_v9 = vand.u32 2147483648, %v1910_v40  ;;  %vm1917_vm11 = vweird.f32 %v1910_v40 }
 0x9d1   :  { %v1921_v30 = vand.u32 2147483647, %v1910_v40 }
 0x9d2   :  { %v1904_v48 = vmul.f32 %v1903_v28, %v1885_v51  ;;  %v1924_v31 = vor.u32 1.1754944e-38, %v1923_v9 }
 0x9d3   :  { %vm1922_vm13 = vcmp.eq.f32.partialorder %v1921_v30, 8.507059e+37 }
 0x9d4   :  { %v1906_v39 = vsel %vm1905_vm6, %v1885_v51, %v1904_v48 }
 0x9d5   :  { %v1909_v46 = vsel %vm1907_vm9, %v1908_v52, %v1906_v39 }
 0x9d6   :  { %v1911_v25 = vmax.f32 %v1909_v46, 1e-12  ;;  %v2502_v50 = vpop.eup %2501 }
 0x9d7   :  { %v1913_v8 = vmul.f32 %v2502_v50, %v1910_v40  ;;  %vm1918_vm10 = vweird.f32 %v2502_v50 }
 0x9d8   :  { %2503 = vrcp.f32 %v1911_v25  ;;  %vm1919_vm12 = vmor %vm1917_vm11, %vm1918_vm10  ;;  %v1938_v62 = vand.u32 2147483648, %v1911_v25  ;;  %vm1932_vm15 = vweird.f32 %v1911_v25  ;;  %v1936_v57 = vand.u32 2147483647, %v1911_v25 }
 0x9d9   :  { %v1914_v54 = vsub.f32 1.0, %v1913_v8 }
 0x9da   :  { %v1939_v36 = vor.u32 1.1754944e-38, %v1938_v62  ;;  %vm1937_vm2 = vcmp.eq.f32.partialorder %v1936_v57, 8.507059e+37 }
 0x9db   :  { %v1915_v5 = vmul.f32 %v2502_v50, %v1914_v54 }
 0x9dd   :  { %v1916_v47 = vadd.f32 %v2502_v50, %v1915_v5 }
 0x9de   :  { %v2504_v43 = vpop.eup %2503 }
 0x9df   :  { %v1928_v37 = vmul.f32 %v2504_v43, %v1911_v25  ;;  %v1920_v14 = vsel %vm1919_vm12, %v2502_v50, %v1916_v47  ;;  %vm1933_vm14 = vweird.f32 %v2504_v43 }
 0x9e0   :  { %v1925_v34 = vsel %vm1922_vm13, %v1924_v31, %v1920_v14  ;;  %vm1934_vm3 = vmor %vm1932_vm15, %vm1933_vm14 }
 0x9e1   :  { %v1929_v3 = vsub.f32 1.0, %v1928_v37  ;;  %v1926_v13 = vmul.f32 %v1925_v34, %v3880_v44 }
 0x9e3   :  { %v1930_v49 = vmul.f32 %v2504_v43, %v1929_v3  ;;  %v1981_v60 = vsel %vm1009_vm4, %v1926_v13, -1.0 }
 0x9e5   :  { %v1931_v12 = vadd.f32 %v2504_v43, %v1930_v49 }
 0x9e7   :  { %v1935_v29 = vsel %vm1934_vm3, %v2504_v43, %v1931_v12 }
 0x9e8   :  { %v1940_v21 = vsel %vm1937_vm2, %v1939_v36, %v1935_v29 }
 0x9e9   :  { %v1941_v11 = vmul.f32 %v1940_v21, %v3888_v55 }
 0x9eb   :  { %v1982_v1 = vsel %vm1009_vm4, %v1941_v11, -1.0  ;;  %vm2074_vm4 = vcmask 72704  }
 0xa35   :  { %v1976_v18 = vpop.f32.mrf.mxu1 }
 0xa36   :  { %v1983_v63 = vmul.f32 %v1981_v60, %v1976_v18 }
 0xa38   :  { %v1986_v44 = vsel %vm1985_vm5, %v1983_v63, 0.0 }
 0xa39   :  { %1987 = vadd.xlane.f32.xlu1 %v1986_v44 }
 0xa3d   :  { %v1978_v41 = vpop.f32.mrf.mxu1 }
 0xa3e   :  { %v1984_v33 = vmul.f32 %v1982_v1, %v1978_v41 }
 0xa40   :  { %v1989_v53 = vsel %vm1985_vm5, %v1984_v33, 0.0 }
 0xa41   :  { %2065 = vadd.xlane.f32.xlu1 %v2064_v4  ;;  %1990 = vadd.xlane.f32.xlu2 %v1989_v53 }
 0xaac   :  { %v1988_v16 = vpop.xlane.xlu1 %1987 }
 0xaad   :  { %v1992_v15 = vadd.f32 1.0, %v1988_v16 }
 0xaaf   :  { %v1994_v20 = vmax.f32 %v1992_v15, 0.0 }
 0xab4   :  { %v1991_v17 = vpop.xlane.xlu2 %1990  ;;  %v2066_v56 = vpop.xlane.xlu1 %2065 }
 0xab5   :  { %v1993_v51 = vadd.f32 1.0, %v1991_v17  ;;  %v2067_v23 = vrot.slane %v2066_v56, 4 }
 0xab7   :  { %v1995_v27 = vmax.f32 %v1993_v51, 0.0  ;;  %v2068_v32 = vadd.f32 %v2067_v23, %v2066_v56 }
 0xab9   :  { %v1996_v55 = vadd.f32 %v1995_v27, %v1994_v20  ;;  %v2069_v7 = vrot.slane %v2068_v32, 2 }
 0xabb   :  { %v1997_v0 = vrot.slane %v1996_v55, 4  ;;  %v2070_v45 = vadd.f32 %v2069_v7, %v2068_v32 }
 0xabd   :  { %v1998_v61 = vadd.f32 %v1997_v0, %v1996_v55  ;;  %v2071_v38 = vrot.slane %v2070_v45, 1 }
 0xabf   :  { %v1999_v35 = vrot.slane %v1998_v61, 2  ;;  %v2072_v26 = vadd.f32 %v2071_v38, %v2070_v45 }
 0xac1   :  { %v2000_v24 = vadd.f32 %v1999_v35, %v1998_v61 }
 0xac3   :  { %v2001_v59 = vrot.slane %v2000_v24, 1 }
 0xac5   :  { %v2002_v22 = vadd.f32 %v2001_v59, %v2000_v24 }
 0xac7   :  { %v2003_v28 = vmul.f32 0.0625, %v2002_v22 }
 0xac9   :  { %v2073_v19 = vsel %vm1322_vm7, %v3800_v6, %v2003_v28 }
 0xaca   :  { %v2075_v48 = vsel %vm2074_vm4, %v2073_v19, %v2072_v26 }
 0xacb   :  { %v2077_v40 = vsel %vm2076_vm0, %v2075_v48, 0.0 }
 0xacc   :  { %2078 = vst [vmem:[%s3922_s6] sm:$0xff] %v2077_v40 }

</bundles_post_ra>
